<compile_context>
chip_gen: v7x
topology: tpu7x:2x2x1
jax: 0.10.0
libtpu: 0.0.40
codegen_flags: <defaults>
</compile_context>

<pallas_src>
import functools

import jax
import jax.numpy as jnp
from jax.experimental import pallas as pl
from jax.experimental.pallas import tpu as pltpu

_LANE = 128


def _round_up(x, m):
    return (x + m - 1) // m * m


def _choose_tiles(n):
    """Row tile, k tile and padded node count.

    Row-tile count is forced even (>=2) so the "parallel" axis splits across the
    two v7x TensorCores; k tile is the largest 128-multiple (<=1024) dividing
    n_pad so the adjacency stream uses large, lane-dense DMAs.
    """
    n = max(n, 8)
    if n > 4096:
        tile_r = 512
    elif n > 256:
        tile_r = 256
    else:
        tile_r = 128
    n_pad = _round_up(n, 2 * tile_r)
    tile_k = n_pad
    for tk in (1024, 512, 256):
        if n_pad % tk == 0:
            tile_k = tk
            break
    return tile_r, tile_k, n_pad


def _pad2(x, r, c):
    return jnp.pad(x, ((0, r - x.shape[0]), (0, c - x.shape[1])))


# --------------------------------------------------------------------------- #
# Kernel: one GCNConv layer
#   aggregate-first (has_w=True):  o = act( diag(d) (A @ (diag(d) X)) W + b )
#   transform-first (has_w=False): o = act( diag(d) (A @ H0) + b ),  H0 = diag(d) X W
# grid = (row_tiles, k_tiles); k is the (block-sparse) reduction over source nodes.
# --------------------------------------------------------------------------- #
def _gcn_layer_kernel(cnt_ref, blk_ref, dis_ref, a_ref, x_ref, *rest,
                      activation, valid_cols, tile_k, has_w, x_resident):
    if has_w:
        w_ref, b_ref, o_ref, acc_ref = rest
    else:
        b_ref, o_ref, acc_ref = rest

    i = pl.program_id(0)
    k = pl.program_id(1)

    @pl.when(k == 0)
    def _init():
        acc_ref[...] = jnp.zeros_like(acc_ref)

    # Skip k-blocks with no edges (block-sparse); padding entries of blk_ref are
    # clamped to the last valid block so skipped steps incur no new DMA.
    @pl.when(k < cnt_ref[i])
    def _step():
        # int8 -> f32 -> bf16 (two natively supported converts; VPU work hidden
        # under the A-tile DMA / MXU matmul).
        a = a_ref[...].astype(jnp.float32).astype(jnp.bfloat16)
        if x_resident:
            kb = blk_ref[i, k]
            start = pl.multiple_of(kb * tile_k, tile_k)
            xs = x_ref[pl.ds(start, tile_k), :]
        else:
            xs = x_ref[...]
        acc_ref[...] += jnp.dot(a, xs, preferred_element_type=jnp.float32)

    @pl.when(k == pl.num_programs(1) - 1)
    def _finalize():
        if has_w:
            # diag(d) . (acc @ W) == (diag(d) . acc) @ W  -> scale after the matmul.
            z = jnp.dot(acc_ref[...].astype(jnp.bfloat16), w_ref[...],
                        preferred_element_type=jnp.float32)
        else:
            z = acc_ref[...]
        z = dis_ref[...] * z + b_ref[...]
        if activation == "relu":
            o_ref[...] = jnp.maximum(z, 0.0).astype(o_ref.dtype)
        else:  # log_softmax over the class axis; padded class lanes -> -inf
            col = jax.lax.broadcasted_iota(jnp.int32, z.shape, 1)
            z = jnp.where(col < valid_cols, z, -jnp.inf)
            m = jnp.max(z, axis=1, keepdims=True)
            zs = z - m
            lse = jnp.log(jnp.sum(jnp.exp(zs), axis=1, keepdims=True))
            o_ref[...] = (zs - lse).astype(o_ref.dtype)


def _gcn_layer(counts, kblk, dis, a, x, w, b, *, activation, valid_cols,
               out_dtype, tile_r, tile_k):
    n_pad = a.shape[0]
    width = x.shape[1]          # lanes carried through the N^2 contraction
    cout_p = b.shape[1]
    has_w = w is not None
    nb_r = n_pad // tile_r
    nb_k = n_pad // tile_k
    assert n_pad % tile_r == 0 and n_pad % tile_k == 0

    # VMEM-resident features when they fit under a 16 MiB cap (v7x-safe).
    x_bytes = x.size * x.dtype.itemsize
    x_resident = x_bytes <= 16 * 1024 * 1024

    out_isz = jnp.dtype(out_dtype).itemsize
    x_buf = x_bytes if x_resident else tile_k * width * x.dtype.itemsize
    vmem_need = (2 * tile_r * tile_k * a.dtype.itemsize          # A (int8), 2 bufs
                 + 2 * x_buf                                      # features
                 + 2 * tile_r * 4                                 # D^-1/2 rows
                 + (2 * width * cout_p * w.dtype.itemsize if has_w else 0)
                 + 2 * cout_p * 4                                 # bias
                 + 2 * tile_r * cout_p * out_isz                  # output tile
                 + tile_r * width * 4)                            # f32 accumulator
    vmem_limit = min(max(2 * vmem_need, 32 * 1024 * 1024), 48 * 1024 * 1024)

    flops = 2 * n_pad * n_pad * width + (2 * n_pad * width * cout_p if has_w else 0)
    transcend = n_pad * (cout_p + 1) if activation == "log_softmax" else 0
    bytes_accessed = int(
        a.size * a.dtype.itemsize
        + (1 if x_resident else nb_r) * x_bytes
        + dis.size * 4
        + (w.size * w.dtype.itemsize if has_w else 0)
        + b.size * 4
        + n_pad * cout_p * out_isz)

    kernel = functools.partial(
        _gcn_layer_kernel, activation=activation, valid_cols=valid_cols,
        tile_k=tile_k, has_w=has_w, x_resident=x_resident)

    in_specs = [
        pl.BlockSpec((tile_r, 1), lambda i, k, c, bk: (i, 0)),              # D^-1/2 (dst rows)
        pl.BlockSpec((tile_r, tile_k), lambda i, k, c, bk: (i, bk[i, k])),  # A + I (int8)
    ]
    if x_resident:
        in_specs.append(pl.BlockSpec((n_pad, width), lambda i, k, c, bk: (0, 0)))
    else:
        in_specs.append(pl.BlockSpec((tile_k, width),
                                     lambda i, k, c, bk: (bk[i, k], 0)))
    if has_w:
        in_specs.append(pl.BlockSpec((width, cout_p), lambda i, k, c, bk: (0, 0)))
    in_specs.append(pl.BlockSpec((1, cout_p), lambda i, k, c, bk: (0, 0)))

    args = (counts, kblk, dis, a, x) + ((w,) if has_w else ()) + (b,)

    return pl.pallas_call(
        kernel,
        out_shape=jax.ShapeDtypeStruct((n_pad, cout_p), out_dtype),
        grid_spec=pltpu.PrefetchScalarGridSpec(
            num_scalar_prefetch=2,
            grid=(nb_r, nb_k),
            in_specs=in_specs,
            out_specs=pl.BlockSpec((tile_r, cout_p), lambda i, k, c, bk: (i, 0)),
            scratch_shapes=[pltpu.VMEM((tile_r, width), jnp.float32)],
        ),
        compiler_params=pltpu.CompilerParams(
            dimension_semantics=("parallel", "arbitrary"),
            vmem_limit_bytes=vmem_limit,
        ),
        cost_estimate=pl.CostEstimate(
            flops=flops, transcendentals=transcend, bytes_accessed=bytes_accessed),
    )(*args)


# --------------------------------------------------------------------------- #
# JAX glue: dense (A + I), D^{-1/2} and per-row-tile block-sparsity metadata.
# --------------------------------------------------------------------------- #
def _build_adj(n, edge_index):
    """Duplicate edges are counted; self-loops added only where missing
    (matches torch_geometric gcn_norm / add_remaining_self_loops)."""
    # TODO(synk): edge_index scatter + degree normalization stay in plain JAX
    # (dense adjacency build); only the O(N^2) aggregation runs in Pallas.
    src, dst = edge_index[0], edge_index[1]
    a = jnp.zeros((n, n), jnp.float32).at[dst, src].add(1.0)
    diag = jnp.diagonal(a)
    a = a + jnp.diag(jnp.where(diag > 0.0, 0.0, 1.0))
    deg = jnp.sum(a, axis=1)
    d_inv_sqrt = jnp.where(deg > 0.0, jax.lax.rsqrt(deg), 0.0)
    return a, d_inv_sqrt


def _block_meta(a_pad, tile_r, tile_k):
    """Per row tile: count + (sorted, clamped-padded) indices of nonzero k-blocks."""
    n_pad = a_pad.shape[0]
    nb_r, nb_k = n_pad // tile_r, n_pad // tile_k
    a4 = a_pad.reshape(nb_r, tile_r, nb_k, tile_k)
    blk_nz = jnp.any(a4 != 0, axis=(1, 3))                       # (nb_r, nb_k) bool
    counts = jnp.sum(blk_nz, axis=1).astype(jnp.int32)
    order = jnp.argsort((~blk_nz).astype(jnp.int32), axis=1).astype(jnp.int32)
    last = jnp.maximum(counts - 1, 0)[:, None]
    idx = jnp.arange(nb_k, dtype=jnp.int32)[None, :]
    kblk = jnp.where(idx < counts[:, None], order,
                     jnp.take_along_axis(order, last, axis=1)).astype(jnp.int32)
    return counts, kblk


def gcn_forward(x, edge_index, w1, b1, w2, b2):
    """Forward of GCN: log_softmax(GCNConv2(relu(GCNConv1(x, A)), A), dim=1)."""
    n, cin = x.shape
    hid = w1.shape[1]
    out_ch = w2.shape[1]

    a, dis = _build_adj(n, edge_index)

    tile_r, tile_k, n_pad = _choose_tiles(n)
    cin_p = _round_up(cin, _LANE)
    hid_p = _round_up(hid, _LANE)
    out_p = _round_up(out_ch, _LANE)

    # int8 adjacency (small integer edge counts are exact); padding rows/cols zero.
    a_i8 = _pad2(a, n_pad, n_pad).astype(jnp.int8)
    dis_p = jnp.pad(dis, (0, n_pad - n)).reshape(n_pad, 1).astype(jnp.float32)
    counts, kblk = _block_meta(a_i8, tile_r, tile_k)

    # Pre-scale source features by D^{-1/2} once (one-shot, replaces per-step cast chain).
    xs = x * dis[:, None]

    # ---------------- layer 1: pick matmul order by carried lane width -------
    if cin_p > hid_p:
        h0 = xs @ w1                                   # tiny transform first (f32)
        feat1 = _pad2(h0, n_pad, hid_p).astype(jnp.bfloat16)
        w1_arg = None
    else:
        feat1 = _pad2(xs, n_pad, cin_p).astype(jnp.bfloat16)
        w1_arg = _pad2(w1, cin_p, hid_p).astype(jnp.bfloat16)
    b1_p = jnp.pad(b1, (0, hid_p - hid)).reshape(1, hid_p).astype(jnp.float32)

    h = _gcn_layer(counts, kblk, dis_p, a_i8, feat1, w1_arg, b1_p,
                   activation="relu", valid_cols=hid, out_dtype=jnp.bfloat16,
                   tile_r=tile_r, tile_k=tile_k)

    # ---------------- layer 2 -------------------------------------------------
    hs = (h.astype(jnp.float32) * dis_p).astype(jnp.bfloat16)   # D^-1/2[src] * h
    w2_p = _pad2(w2, hid_p, out_p)
    if hid_p > out_p:
        feat2 = (hs.astype(jnp.float32) @ w2_p).astype(jnp.bfloat16)
        w2_arg = None
    else:
        feat2 = hs
        w2_arg = w2_p.astype(jnp.bfloat16)
    b2_p = jnp.pad(b2, (0, out_p - out_ch)).reshape(1, out_p).astype(jnp.float32)

    z = _gcn_layer(counts, kblk, dis_p, a_i8, feat2, w2_arg, b2_p,
                   activation="log_softmax", valid_cols=out_ch,
                   out_dtype=jnp.float32, tile_r=tile_r, tile_k=tile_k)
    return z[:n, :out_ch]


def gcn_reference(x, edge_index, w1, b1, w2, b2):
    a, dis = _build_adj(x.shape[0], edge_index)
    a_hat = dis[:, None] * a * dis[None, :]
    h = jnp.maximum(a_hat @ (x @ w1) + b1, 0.0)
    z = a_hat @ (h @ w2) + b2
    return jax.nn.log_softmax(z, axis=1)


def _glorot(key, shape):
    fan_in, fan_out = shape
    lim = jnp.sqrt(6.0 / (fan_in + fan_out))
    return jax.random.uniform(key, shape, jnp.float32, -lim, lim)


if __name__ == "__main__":
    # Small synthetic graph: 300 nodes (pads to 512 -> 2 row tiles of 256, even
    # for v7x megacore), in=200 features (pads to 256 -> exercises the
    # transform-first path in layer 1), hidden=32, out=7 classes (Cora-like;
    # layer 2 exercises the aggregate-first / in-kernel-W path).
    N, IN_CH, HID_CH, OUT_CH = 300, 200, 32, 7

    key = jax.random.PRNGKey(0)
    k_x, k_e1, k_e2, k_w1, k_w2, k_b1, k_b2 = jax.random.split(key, 7)

    x = jax.random.normal(k_x, (N, IN_CH), jnp.float32)

    # Random undirected edge list (no self-loops; GCNConv adds them).
    E_half = 900
    src = jax.random.randint(k_e1, (E_half,), 0, N)
    dst = (src + 1 + jax.random.randint(k_e2, (E_half,), 0, N - 1)) % N
    edge_index = jnp.stack(
        [jnp.concatenate([src, dst]), jnp.concatenate([dst, src])]
    ).astype(jnp.int32)

    w1 = _glorot(k_w1, (IN_CH, HID_CH))
    b1 = 0.01 * jax.random.normal(k_b1, (HID_CH,), jnp.float32)
    w2 = _glorot(k_w2, (HID_CH, OUT_CH))
    b2 = 0.01 * jax.random.normal(k_b2, (OUT_CH,), jnp.float32)

    out = jax.block_until_ready(gcn_forward(x, edge_index, w1, b1, w2, b2))
    ref = gcn_reference(x, edge_index, w1, b1, w2, b2)

    assert out.shape == (N, OUT_CH)
    # log_softmax rows must exponentiate-and-sum to ~1
    assert bool(jnp.allclose(jnp.sum(jnp.exp(out), axis=1), 1.0, atol=1e-3))
    # int8/bf16 streaming path vs. the f32 reference
    assert bool(jnp.allclose(out, ref, atol=1e-1, rtol=1e-1)), \
        float(jnp.max(jnp.abs(out - ref)))
    print("KERNEL_OK")
</pallas_src>

<mosaic_0001>
module attributes {stable_mosaic.version = 11 : i64} {
  func.func @_gcn_layer_kernel(%arg0: i32, %arg1: i32, %arg2: memref<2xi32, #tpu.memory_space<smem>>, %arg3: memref<2x1xi32, #tpu.memory_space<smem>>, %arg4: memref<256x1xf32, #tpu.memory_space<vmem>>, %arg5: memref<256x512xi8, #tpu.memory_space<vmem>>, %arg6: memref<512x128xbf16, #tpu.memory_space<vmem>>, %arg7: memref<1x128xf32, #tpu.memory_space<vmem>>, %arg8: memref<256x128xbf16, #tpu.memory_space<vmem>>, %arg9: memref<256x128xf32, #tpu.memory_space<vmem>>) attributes {dimension_semantics = [#tpu.dimension_semantics<parallel>, #tpu.dimension_semantics<arbitrary>], iteration_bounds = array<i64: 2, 1>, scalar_prefetch = 2 : i64, scratch_operands = 1 : i64, tpu.core_type = #tpu.core_type<tc>, window_params = [{transform_indices = @transform_0, window_bounds = array<i64: 256, 1>}, {transform_indices = @transform_1, window_bounds = array<i64: 256, 512>}, {pipeline_mode = #tpu.pipeline_mode<synchronous>, transform_indices = @transform_2, window_bounds = array<i64: 512, 128>}, {pipeline_mode = #tpu.pipeline_mode<synchronous>, transform_indices = @transform_3, window_bounds = array<i64: 1, 128>}, {transform_indices = @transform_4, window_bounds = array<i64: 256, 128>}]} {
    %c0_i32 = arith.constant 0 : i32
    %0 = arith.cmpi eq, %arg1, %c0_i32 : i32
    %1 = arith.extui %0 : i1 to i32
    %c0_i32_0 = arith.constant 0 : i32
    %2 = arith.cmpi ne, %1, %c0_i32_0 : i32
    scf.if %2 {
      %cst = arith.constant 0.000000e+00 : f32
      %11 = vector.broadcast %cst : f32 to vector<256x128xf32>
      %c0 = arith.constant 0 : index
      %c0_4 = arith.constant 0 : index
      %12 = vector.load %arg9[%c0, %c0_4] : memref<256x128xf32, #tpu.memory_space<vmem>>, vector<256x128xf32>
      tpu.vector_store %arg9[%c0, %c0_4], %11 {strides = array<i32>} : memref<256x128xf32, #tpu.memory_space<vmem>>, vector<256x128xf32>,
    } else {
    }
    %3 = arith.index_cast %arg0 : i32 to index
    %4 = memref.load %arg2[%3] : memref<2xi32, #tpu.memory_space<smem>>
    %5 = arith.cmpi slt, %arg1, %4 : i32
    %6 = arith.extui %5 : i1 to i32
    %c0_i32_1 = arith.constant 0 : i32
    %7 = arith.cmpi ne, %6, %c0_i32_1 : i32
    scf.if %7 {
      %c0 = arith.constant 0 : index
      %c0_4 = arith.constant 0 : index
      %11 = vector.load %arg5[%c0, %c0_4] : memref<256x512xi8, #tpu.memory_space<vmem>>, vector<256x512xi8>
      %12 = arith.sitofp %11 : vector<256x512xi8> to vector<256x512xf32>
      %13 = arith.truncf %12 : vector<256x512xf32> to vector<256x512xbf16>
      %14 = arith.index_cast %arg0 : i32 to index
      %15 = arith.index_cast %arg1 : i32 to index
      %16 = memref.load %arg3[%14, %15] : memref<2x1xi32, #tpu.memory_space<smem>>
      %c512_i32 = arith.constant 512 : i32
      %17 = arith.muli %16, %c512_i32 : i32
      %18 = tpu.assume_multiple %17, 512 : i32
      %19 = arith.index_cast %18 : i32 to index
      %c0_5 = arith.constant 0 : index
      %20 = vector.load %arg6[%19, %c0_5] : memref<512x128xbf16, #tpu.memory_space<vmem>>, vector<512x128xbf16>
      %c0_6 = arith.constant 0 : index
      %c0_7 = arith.constant 0 : index
      %21 = vector.load %arg9[%c0_6, %c0_7] : memref<256x128xf32, #tpu.memory_space<vmem>>, vector<256x128xf32>
      %cst = arith.constant dense<0.000000e+00> : vector<256x128xf32>
      %22 = tpu.matmul %13, %20, %cst {dimension_numbers = #tpu.dot_dimension_numbers<[1], [0], [0], [1], [0, 0, 1, 1], [], []>} : vector<256x512xbf16>, vector<512x128xbf16>, vector<256x128xf32> -> vector<256x128xf32>
      %23 = arith.addf %21, %22 : vector<256x128xf32>
      %c0_8 = arith.constant 0 : index
      %c0_9 = arith.constant 0 : index
      %24 = vector.load %arg9[%c0_8, %c0_9] : memref<256x128xf32, #tpu.memory_space<vmem>>, vector<256x128xf32>
      tpu.vector_store %arg9[%c0_8, %c0_9], %23 {strides = array<i32>} : memref<256x128xf32, #tpu.memory_space<vmem>>, vector<256x128xf32>,
    } else {
    }
    %c0_i32_2 = arith.constant 0 : i32
    %8 = arith.cmpi eq, %arg1, %c0_i32_2 : i32
    %9 = arith.extui %8 : i1 to i32
    %c0_i32_3 = arith.constant 0 : i32
    %10 = arith.cmpi ne, %9, %c0_i32_3 : i32
    scf.if %10 {
      %c0 = arith.constant 0 : index
      %c0_4 = arith.constant 0 : index
      %11 = vector.load %arg9[%c0, %c0_4] : memref<256x128xf32, #tpu.memory_space<vmem>>, vector<256x128xf32>
      %c0_5 = arith.constant 0 : index
      %c0_6 = arith.constant 0 : index
      %12 = vector.load %arg4[%c0_5, %c0_6] : memref<256x1xf32, #tpu.memory_space<vmem>>, vector<256x1xf32>
      %13 = vector.broadcast %12 : vector<256x1xf32> to vector<256x128xf32>
      %14 = arith.mulf %13, %11 : vector<256x128xf32>
      %c0_7 = arith.constant 0 : index
      %c0_8 = arith.constant 0 : index
      %15 = vector.load %arg7[%c0_7, %c0_8] : memref<1x128xf32, #tpu.memory_space<vmem>>, vector<1x128xf32>
      %16 = vector.broadcast %15 : vector<1x128xf32> to vector<256x128xf32>
      %17 = arith.addf %14, %16 : vector<256x128xf32>
      %cst = arith.constant 0.000000e+00 : f32
      %18 = vector.broadcast %cst : f32 to vector<256x128xf32>
      %19 = arith.maximumf %17, %18 : vector<256x128xf32>
      %20 = arith.truncf %19 : vector<256x128xf32> to vector<256x128xbf16>
      %c0_9 = arith.constant 0 : index
      %c0_10 = arith.constant 0 : index
      %21 = vector.load %arg8[%c0_9, %c0_10] : memref<256x128xbf16, #tpu.memory_space<vmem>>, vector<256x128xbf16>
      tpu.vector_store %arg8[%c0_9, %c0_10], %20 {strides = array<i32>} : memref<256x128xbf16, #tpu.memory_space<vmem>>, vector<256x128xbf16>,
    } else {
    }
    return
  }
  func.func @transform_0(%arg0: i32, %arg1: i32, %arg2: memref<2xi32, #tpu.memory_space<smem>>, %arg3: memref<2x1xi32, #tpu.memory_space<smem>>) -> (i32, i32) {
    %c0_i32 = arith.constant 0 : i32
    %c0_i32_0 = arith.constant 0 : i32
    return %arg0, %c0_i32 : i32, i32
  }
  func.func @transform_1(%arg0: i32, %arg1: i32, %arg2: memref<2xi32, #tpu.memory_space<smem>>, %arg3: memref<2x1xi32, #tpu.memory_space<smem>>) -> (i32, i32) {
    %0 = arith.index_cast %arg0 : i32 to index
    %1 = arith.index_cast %arg1 : i32 to index
    %2 = memref.load %arg3[%0, %1] : memref<2x1xi32, #tpu.memory_space<smem>>
    %c0_i32 = arith.constant 0 : i32
    return %arg0, %2 : i32, i32
  }
  func.func @transform_2(%arg0: i32, %arg1: i32, %arg2: memref<2xi32, #tpu.memory_space<smem>>, %arg3: memref<2x1xi32, #tpu.memory_space<smem>>) -> (i32, i32) {
    %c0_i32 = arith.constant 0 : i32
    %c0_i32_0 = arith.constant 0 : i32
    %c0_i32_1 = arith.constant 0 : i32
    return %c0_i32, %c0_i32_0 : i32, i32
  }
  func.func @transform_3(%arg0: i32, %arg1: i32, %arg2: memref<2xi32, #tpu.memory_space<smem>>, %arg3: memref<2x1xi32, #tpu.memory_space<smem>>) -> (i32, i32) {
    %c0_i32 = arith.constant 0 : i32
    %c0_i32_0 = arith.constant 0 : i32
    %c0_i32_1 = arith.constant 0 : i32
    return %c0_i32, %c0_i32_0 : i32, i32
  }
  func.func @transform_4(%arg0: i32, %arg1: i32, %arg2: memref<2xi32, #tpu.memory_space<smem>>, %arg3: memref<2x1xi32, #tpu.memory_space<smem>>) -> (i32, i32) {
    %c0_i32 = arith.constant 0 : i32
    %c0_i32_0 = arith.constant 0 : i32
    return %arg0, %c0_i32 : i32, i32
  }
}

</mosaic_0001>

<bundles_post_ra>
// kernel: tpu_custom_call.1
= control target key start
LH: loop header
LB: loop body
LE: loop exit
PB: predicated region body
PF: predicated region fallthrough
CT: control target
= control target key end

     0   :  { %s2852_s0 = inlined_call_operand.vmem [shape: s32[2], index: 0, kind: input, shape index: {}]   ;;  %s2853_s2 = inlined_call_operand.vmem [shape: f32[512,1], index: 2, kind: input, shape index: {}]   ;;  %s2854_s3 = inlined_call_operand.vmem [shape: s8[512,512], index: 3, kind: input, shape index: {}]   ;;  %s2855_s4 = inlined_call_operand.hbm [shape: bf16[512,128], index: 4, kind: input, shape index: {}]   ;;  %s2856_s5 = inlined_call_operand.vmem [shape: f32[1,128], index: 5, kind: input, shape index: {}]   ;;  %s2857_s6 = inlined_call_operand.hbm [shape: bf16[512,128], index: 6, kind: output, shape index: {}]   ;;  %s2858_s1 = inlined_call_operand.vmem [shape: s32[2,1], index: 1, kind: input, shape index: {}]  }
   0x1   :  { %2865 = sst [smem:[#allocation13_spill]] %s2855_s4  ;;  %s11_s23 = sshll.u32 %s2852_s0, 4  ;;  %s12_s23 = int_to_ptr.vmem [resolvable:$true] %s11_s23 }
   0x2   :  { %s15_s26 = sshll.u32 %s2858_s1, 4  ;;  %s2318_s27 = scalar_lea.vmem %s12_s23, 16  ;;  %s16_s26 = int_to_ptr.vmem [resolvable:$true] %s15_s26 }
   0x3   :  { %p2319_p0 = scmp.ne.s32.totalorder %s12_s23, %s2318_s27  ;;  %p2323_p1 = scmp.lt.s32.totalorder %s12_s23, %s12_s23 }
   0x4   :  { %p2324_p2 = scmp.lt.s32.totalorder %s2318_s27, %s2318_s27 }
   0x6   :  { %p2325_p3 = por %p2324_p2, %p2323_p1 }
   0x8   :  { %p2326_p4 = pnand %p2325_p3, %p2319_p0 }
   0xa   :  { %2329 = shalt.err (!%p2326_p4)  }
   0xb   :  { %s2456_s28 = smov [#allocation4]   ;;  %s2330_s29 = scalar_lea.vmem %s16_s26, 32 }
   0xc   :  { %14 = dma.vmem_to_smem %s12_s23, 16, %s2456_s28, [#allocation3] }
   0xd   :  { %p2331_p5 = scmp.ne.s32.totalorder %s16_s26, %s2330_s29  ;;  %p2335_p6 = scmp.lt.s32.totalorder %s16_s26, %s16_s26 }
   0xe   :  { %p2336_p7 = scmp.lt.s32.totalorder %s2330_s29, %s2330_s29 }
  0x10   :  { %p2337_p8 = por %p2336_p7, %p2335_p6 }
  0x12   :  { %p2338_p9 = pnand %p2337_p8, %p2331_p5 }
  0x14   :  { %2341 = shalt.err (!%p2338_p9)  }
  0x15   :  { %s2457_s0 = smov [#allocation5]  }
  0x16   :  { %18 = dma.vmem_to_smem %s16_s26, 32, %s2457_s0, [#allocation3] }
  0x17   :  { %2422 = dma.done.wait [#allocation3], 48 }
  0x18   :  { %2423 = vsyncadd [#allocation3], 4294967248 }
  0x19   :  { %20 = sfence }
  0x1a   :  { %21 = vsyncpa [#allocation7], 0 }
  0x1b   :  { %22 = vsyncpa [#allocation8], 0 }
  0x1c   :  { %24 = vsyncpa [#allocation8 + $0x1], 0  ;;  %s2507_s1 = smov 0   ;;  %s2509_s30 = smov 0  }
  0x1d   :  { %s2511_s7 = smov 0   ;;  %s2513_s8 = smov 0  }
  0x1e   :  { %s2515_s9 = smov 0   ;;  %s2517_s10 = smov 0  }
  0x1f LB: > { %s1766_s11 = sadd.s32 4294967295, %s2454_s10   ;;  %s1767_s12 = sadd.s32 4294967294, %s2454_s10   ;;  %s2454_s10 = sphi %s2517_s10, %s30_s10   ;;  %s2450_s9 = sphi %s2515_s9, %s2883_s9   ;;  %s2446_s8 = sphi %s2513_s8, %s2882_s8   ;;  %s2442_s7 = sphi %s2511_s7, %s2881_s7   ;;  %s2438_s30 = sphi %s2509_s30, %s2880_s30   ;;  %s2434_s1 = sphi %s2507_s1, %s2879_s1  }
  0x20   : > { %s42_s13 = sadd.s32 1, %s2450_s9  ;;  %s161_s14 = sadd.s32 1, %s2442_s7 }
  0x21   : > { %p44_p10 = scmp.ge.s32.totalorder %s42_s13, 2  ;;  %p171_p11 = scmp.ne.s32.totalorder %s2442_s7, %s2438_s30 }
  0x22   : > { %p172_p12 = scmp.eq.s32.totalorder %s1766_s11, 1  ;;  %p177_p13 = scmp.ne.s32.totalorder %s2438_s30, %s2434_s1 }
  0x23   : > { %s2885_s13 = smov (%p44_p10, %s42_s13), 0  ;;  %p178_p1 = scmp.eq.s32.totalorder %s1767_s12, 1 }
  0x24   : > { %p2547_p0 = por %p172_p12, %p171_p11  ;;  %s158_s16 = ssub.s32 %s2450_s9, %s2885_s13 }
  0x25   : > { %p1770_p2 = scmp.ge.s32.totalorder %s2454_s10, 1  ;;  %p159_p3 = scmp.eq.s32.totalorder %s158_s16, 0 }
  0x26   : > { %s2866_s15 = scalar_select %p2547_p0, 1, 0 }
  0x27   : > { %p2554_p4 = por %p178_p1, %p177_p13  ;;  %p185_p5 = scmp.lt.s32.totalorder %s2454_s10, 3 }
  0x28   : > { %s2560_s18 = scalar_select %p159_p3, %s2442_s7, %s161_s14  }
  0x29   : > { %s2867_s17 = scalar_select %p2554_p4, 1, 0 }
  0x2a   : > { %p2562_p6 = pnand %p1770_p2, %p185_p5  ;;  %p2566_p7 = scmp.eq.s32.totalorder %s1766_s11, 0 }
  0x2b   : > { %s2458_s21 = smov [#allocation6]   ;;  %s2871_s4 = sld [smem:[#allocation13_spill]] }
  0x2c   : > { %s2868_s19 = scalar_select %p2562_p6, 1, 0 }
  0x2d   : > { %s2869_s20 = scalar_select %p2566_p7, 1, 0 }
  0x2e   : > { %p2216_p8 = pneg %p2562_p6  ;;  %s197_s22 = sshll.u32 %s2458_s21, 4  ;;  %s198_s22 = int_to_ptr.vmem [resolvable:$true] %s197_s22 }
  0x30   : > { %p2574_p9 = pnand %p2566_p7, %p2216_p8 }
  0x31   : > { %s2342_s26 = scalar_lea.hbm %s2871_s4, 4096 }
  0x32   : > { %p2343_p10 = scmp.ne.s32.totalorder %s2871_s4, %s2342_s26  ;;  %p2344_p11 = pneg %p2574_p9 }
  0x33   : > { %p2349_p1 = scmp.lt.u32.totalorder %s2342_s26, %s2871_s4 }
  0x34   : > { %p2345_p12 = pnand %p2344_p11, %p2343_p10 }
  0x36   : > { %p2346_p13 = pneg %p2345_p12 }
  0x38   : > { %p2351_p2 = pnand %p2349_p1, %p2346_p13 }
  0x3a   : > { %2354 = shalt.err (!%p2351_p2)
}
  0x3b   : > { %s2355_s11 = scalar_lea.vmem %s198_s22, 4096  ;;  %p2363_p4 = scmp.lt.s32.totalorder %s198_s22, %s198_s22 }
  0x3c   : > { %p2356_p3 = scmp.ne.s32.totalorder %s198_s22, %s2355_s11  ;;  %p2364_p0 = scmp.lt.s32.totalorder %s2355_s11, %s2355_s11 }
  0x3e   : > { %p2358_p5 = pnand %p2356_p3, %p2344_p11  ;;  %p2365_p7 = por %p2364_p0, %p2363_p4 }
  0x40   : > { %p2359_p8 = pneg %p2358_p5 }
  0x42   : > { %p2366_p6 = pnand %p2365_p7, %p2359_p8 }
  0x44   : > { %2369 = shalt.err (!%p2366_p6)
}
  0x45   : > { %s2459_s12 = smov 64   ;;  %s2460_s14 = smov 4  }
  0x46   : > { %2219 = dma.hbm_to_vmem [thread:$0]  (!%p2574_p9), %s2871_s4, 4096, %s198_s22, [#allocation7], %s2459_s12, %s2459_s12, %s2460_s14  }
  0x47   : > { %p2872_p10 = scmp.ne.s32.totalorder %s2868_s19, 0 }
  0x48   : > { %p2873_p12 = scmp.ne.s32.totalorder (!%p2872_p10), %s2869_s20, 0 }
  0x49   : > { %256 = sbr.rel (%p2872_p10) target bundleno = 693 (0x2b5), region = 36 }
  0x50   : > { %2425 = dma.done.wait (%p2873_p12), [#allocation7], 4096  }
  0x51   : > { %2427 = vsyncadd (%p2873_p12), [#allocation7], 4294963200  ;;  %s2863_s24 = sshll.u32 %s2446_s8, 7  ;;  %s1779_s25 = sshll.u32 %s2446_s8, 3  ;;  %v2461_v0 = vmov 0.0  }
  0x52   : > { %s2604_s23 = sld [smem:[#allocation5 + %s2863_s24]]  ;;  %p2608_p0 = scmp.lt.s32.totalorder %s1779_s25, 15  ;;  %340 = vst [vmem:[#allocation2] sm:$0xff] %v2461_v0  ;;  %341 = vst [vmem:[#allocation2 + $0x8] sm:$0xff] %v2461_v0 }
  0x53   : > { %342 = vst [vmem:[#allocation2 + $0x10] sm:$0xff] %v2461_v0  ;;  %343 = vst [vmem:[#allocation2 + $0x18] sm:$0xff] %v2461_v0  ;;  %s372_s19 = sld [smem:[#allocation4 + %s2446_s8]]  ;;  %s2864_s20 = sand.u32 1, %s2438_s30  }
  0x54   : > { %344 = vst [vmem:[#allocation2 + $0x20] sm:$0xff] %v2461_v0  ;;  %345 = vst [vmem:[#allocation2 + $0x28] sm:$0xff] %v2461_v0  ;;  %s2887_s25 = smov (!%p2608_p0, %s1779_s25), 15  ;;  %s1775_s26 = sshll.u32 %s2864_s20, 7 }
  0x55   : > { %346 = vst [vmem:[#allocation2 + $0x30] sm:$0xff] %v2461_v0  ;;  %347 = vst [vmem:[#allocation2 + $0x38] sm:$0xff] %v2461_v0  ;;  %s1776_s27 = sshll.u32 %s2446_s8, 5  ;;  %s1781_s29 = sshll.u32 %s2887_s25, 2 }
  0x56   : > { %348 = vst [vmem:[#allocation2 + $0x40] sm:$0xff] %v2461_v0  ;;  %349 = vst [vmem:[#allocation2 + $0x48] sm:$0xff] %v2461_v0  ;;  %p301_p4 = scmp.lt.s32.totalorder %s1776_s27, 63  ;;  %s2632_s20 = scalar_lea.vmem [#allocation9], %s1775_s26 }
  0x57   : > { %350 = vst [vmem:[#allocation2 + $0x50] sm:$0xff] %v2461_v0  ;;  %351 = vst [vmem:[#allocation2 + $0x58] sm:$0xff] %v2461_v0 }
  0x58   : > { %352 = vst [vmem:[#allocation2 + $0x60] sm:$0xff] %v2461_v0  ;;  %353 = vst [vmem:[#allocation2 + $0x68] sm:$0xff] %v2461_v0  ;;  %s1780_s28 = sshll.u32 %s2604_s23, 2  ;;  %s2889_s27 = smov (!%p301_p4, %s1776_s27), 63 }
  0x59   : > { %354 = vst [vmem:[#allocation2 + $0x70] sm:$0xff] %v2461_v0  ;;  %355 = vst [vmem:[#allocation2 + $0x78] sm:$0xff] %v2461_v0  ;;  %p318_p6 = scmp.lt.s32.totalorder %s1780_s28, 3  ;;  %s1777_s0 = sshll.u32 %s2889_s27, 3 }
  0x5a   : > { %356 = vst [vmem:[#allocation2 + $0x80] sm:$0xff] %v2461_v0  ;;  %357 = vst [vmem:[#allocation2 + $0x88] sm:$0xff] %v2461_v0  ;;  %s2625_s16 = scalar_lea.vmem %s2853_s2, %s1777_s0  ;;  %p1784_p7 = scmp.le.s32.totalorder %s372_s19, 0 }
  0x5b   : > { %358 = vst [vmem:[#allocation2 + $0x90] sm:$0xff] %v2461_v0  ;;  %359 = vst [vmem:[#allocation2 + $0x98] sm:$0xff] %v2461_v0  ;;  %s2891_s28 = smov (!%p318_p6, %s1780_s28), 3  ;;  %s2875_s25 = sshll.u32 (!%p1784_p7), %s2446_s8, 7 }
  0x5c   : > { %360 = vst [vmem:[#allocation2 + $0xa0] sm:$0xff] %v2461_v0  ;;  %361 = vst [vmem:[#allocation2 + $0xa8] sm:$0xff] %v2461_v0  ;;  %s321_s11 = sadd.s32 %s1781_s29, %s2891_s28  ;;  %376 = sbr.rel (%p1784_p7) target bundleno = 480 (0x1e0), region = 48 }
  0x5d   : > { %362 = vst [vmem:[#allocation2 + $0xb0] sm:$0xff] %v2461_v0  ;;  %363 = vst [vmem:[#allocation2 + $0xb8] sm:$0xff] %v2461_v0  ;;  %s1782_s21 = sshll.u32 %s321_s11, 3  ;;  %s480_s23 = sld [smem:[#allocation5 + %s2875_s25]] (!%p1784_p7) }
  0x5e   : > { %364 = vst [vmem:[#allocation2 + $0xc0] sm:$0xff] %v2461_v0  ;;  %365 = vst [vmem:[#allocation2 + $0xc8] sm:$0xff] %v2461_v0  ;;  %s2630_s4 = scalar_lea.vmem %s2854_s3, %s1782_s21 }
  0x5f   : > { %366 = vst [vmem:[#allocation2 + $0xd0] sm:$0xff] %v2461_v0  ;;  %367 = vst [vmem:[#allocation2 + $0xd8] sm:$0xff] %v2461_v0  ;;  %v2637_v1 = vld [vmem:[%s2630_s4 + $0x8] sm:$0xff] (!%p1784_p7)  ;;  %v2640_v2 = vld [vmem:[%s2630_s4 + $0x18] sm:$0xff] (!%p1784_p7) }
  0x60   : > { %368 = vst [vmem:[#allocation2 + $0xe0] sm:$0xff] %v2461_v0  ;;  %369 = vst [vmem:[#allocation2 + $0xe8] sm:$0xff] %v2461_v0  ;;  %v410_v3 = vunpack.c.l.s8.bf16 (!%p1784_p7), %v2637_v1  ;;  %v412_v4 = vunpack.c.l.s8.bf16 (!%p1784_p7), %v2640_v2  ;;  %v377_v32 = vld [vmem:[%s2630_s4] sm:$0xff] (!%p1784_p7)  ;;  %v379_v34 = vld [vmem:[%s2630_s4 + $0x10] sm:$0xff] (!%p1784_p7)  ;;  %v414_v40 = vunpack.c.h.s8.bf16 (!%p1784_p7), %v2637_v1  ;;  %v416_v42 = vunpack.c.h.s8.bf16 (!%p1784_p7), %v2640_v2 }
  0x61   : > { %370 = vst [vmem:[#allocation2 + $0xf0] sm:$0xff] %v2461_v0  ;;  %371 = vst [vmem:[#allocation2 + $0xf8] sm:$0xff] %v2461_v0  ;;  %v409_v39 = vunpack.c.l.s8.bf16 (!%p1784_p7), %v377_v32  ;;  %v411_v41 = vunpack.c.l.s8.bf16 (!%p1784_p7), %v379_v34  ;;  %v382_v43 = vld [vmem:[%s2630_s4 + $0x28] sm:$0xff] (!%p1784_p7)  ;;  %v384_v44 = vld [vmem:[%s2630_s4 + $0x38] sm:$0xff] (!%p1784_p7)  ;;  %v413_v45 = vunpack.c.h.s8.bf16 (!%p1784_p7), %v377_v32  ;;  %v415_v46 = vunpack.c.h.s8.bf16 (!%p1784_p7), %v379_v34 }
  0x62   : > { %806 = vmatprep.mubr.bf16.mxu0 (!%p1784_p7), %v410_v3  ;;  %967 = vmatprep.mubr.bf16.mxu1 (!%p1784_p7), %v412_v4  ;;  %v418_v47 = vunpack.c.l.s8.bf16 (!%p1784_p7), %v382_v43  ;;  %v420_v48 = vunpack.c.l.s8.bf16 (!%p1784_p7), %v384_v44  ;;  %v381_v49 = vld [vmem:[%s2630_s4 + $0x20] sm:$0xff] (!%p1784_p7)  ;;  %v383_v50 = vld [vmem:[%s2630_s4 + $0x30] sm:$0xff] (!%p1784_p7)  ;;  %v422_v53 = vunpack.c.h.s8.bf16 (!%p1784_p7), %v382_v43  ;;  %v424_v54 = vunpack.c.h.s8.bf16 (!%p1784_p7), %v384_v44  ;;  %v386_v55 = vld [vmem:[%s2630_s4 + $0x48] sm:$0xff] (!%p1784_p7) }
  0x63   : > { %s1786_s24 = sshll.u32 %s480_s23, 9  ;;  %v417_v51 = vunpack.c.l.s8.bf16 %v381_v49  ;;  %v419_v52 = vunpack.c.l.s8.bf16 %v383_v50  ;;  %v388_v56 = vld [vmem:[%s2630_s4 + $0x58] sm:$0xff]  ;;  %v421_v57 = vunpack.c.h.s8.bf16 %v381_v49  ;;  %v423_v58 = vunpack.c.h.s8.bf16 %v383_v50  ;;  %v385_v61 = vld [vmem:[%s2630_s4 + $0x40] sm:$0xff]  ;;  %v387_v62 = vld [vmem:[%s2630_s4 + $0x50] sm:$0xff] }
  0x64   : > { %s482_s26 = sshra.s32 %s1786_s24, 3  ;;  %v426_v59 = vunpack.c.l.s8.bf16 %v386_v55  ;;  %v428_v60 = vunpack.c.l.s8.bf16 %v388_v56  ;;  %v425_v63 = vunpack.c.l.s8.bf16 %v385_v61  ;;  %v427_v0 = vunpack.c.l.s8.bf16 %v387_v62  ;;  %v390_v3 = vld [vmem:[%s2630_s4 + $0x68] sm:$0xff]  ;;  %v392_v4 = vld [vmem:[%s2630_s4 + $0x78] sm:$0xff]  ;;  %v399_v34 = vld [vmem:[%s2630_s4 + $0xb0] sm:$0xff] }
  0x65   : > { %s1787_s27 = sshll.u32 %s482_s26, 2  ;;  %v430_v1 = vunpack.c.h.s8.bf16 %v386_v55  ;;  %v432_v2 = vunpack.c.h.s8.bf16 %v388_v56 }
  0x66   : > { %s2644_s19 = scalar_lea.vmem [#allocation6], %s1787_s27 }
  0x67   : > { %v2284_v5 = vld [vmem:[%s2644_s19 + $0x40] sm:$0xff]   ;;  %v2288_v9 = vld [vmem:[%s2644_s19 + $0x48] sm:$0xff]   ;;  %v2292_v13 = vld [vmem:[%s2644_s19 + $0x50] sm:$0xff]  }
  0x68   : > { %v2285_v6 = vld [vmem:[%s2644_s19 + $0xc0] sm:$0xff]   ;;  %1986 = vmatprep.subr.bf16.mxu0 %v2284_v5  ;;  %v2289_v10 = vld [vmem:[%s2644_s19 + $0xc8] sm:$0xff]   ;;  %v2293_v14 = vld [vmem:[%s2644_s19 + $0xd0] sm:$0xff]   ;;  %v429_v5 = vunpack.c.h.s8.bf16 %v385_v61 }
  0x69   : > { %v2286_v7 = vld [vmem:[%s2644_s19] sm:$0xff]   ;;  %2098 = vmatprep.subr.bf16.mxu1 %v2285_v6  ;;  %v2290_v11 = vld [vmem:[%s2644_s19 + $0x8] sm:$0xff]   ;;  %v2294_v15 = vld [vmem:[%s2644_s19 + $0x10] sm:$0xff]   ;;  %v431_v6 = vunpack.c.h.s8.bf16 %v387_v62 }
  0x6a   : > { %v2287_v8 = vld [vmem:[%s2644_s19 + $0x80] sm:$0xff]   ;;  %1987 = vmatpush3.bf16.msra.mxu0 %v2286_v7  ;;  %v2291_v12 = vld [vmem:[%s2644_s19 + $0x88] sm:$0xff]   ;;  %v2295_v16 = vld [vmem:[%s2644_s19 + $0x90] sm:$0xff]   ;;  %v434_v7 = vunpack.c.l.s8.bf16 %v390_v3 }
  0x6b   : > { %2099 = vmatpush3.bf16.msra.mxu1 %v2287_v8  ;;  %1988 = vmatprep.subr.bf16.mxu0 %v2288_v9  ;;  %v2296_v17 = vld [vmem:[%s2644_s19 + $0x58] sm:$0xff]   ;;  %v2300_v21 = vld [vmem:[%s2644_s19 + $0x60] sm:$0xff]   ;;  %v2304_v25 = vld [vmem:[%s2644_s19 + $0x68] sm:$0xff]   ;;  %v436_v8 = vunpack.c.l.s8.bf16 %v392_v4 }
  0x6c   : > { %2100 = vmatprep.subr.bf16.mxu1 %v2289_v10  ;;  %v2297_v18 = vld [vmem:[%s2644_s19 + $0xd8] sm:$0xff]   ;;  %v2301_v22 = vld [vmem:[%s2644_s19 + $0xe0] sm:$0xff]   ;;  %v2305_v26 = vld [vmem:[%s2644_s19 + $0xe8] sm:$0xff]  }
  0x6d   : > { %v2298_v19 = vld [vmem:[%s2644_s19 + $0x18] sm:$0xff]   ;;  %v2302_v23 = vld [vmem:[%s2644_s19 + $0x20] sm:$0xff]   ;;  %v2306_v27 = vld [vmem:[%s2644_s19 + $0x28] sm:$0xff]  }
  0x6e   : > { %1989 = vmatpush3.bf16.msra.mxu0 %v2290_v11  ;;  %v2299_v20 = vld [vmem:[%s2644_s19 + $0x98] sm:$0xff]   ;;  %v2303_v24 = vld [vmem:[%s2644_s19 + $0xa0] sm:$0xff]   ;;  %v2307_v28 = vld [vmem:[%s2644_s19 + $0xa8] sm:$0xff]  }
  0x6f   : > { %2101 = vmatpush3.bf16.msra.mxu1 %v2291_v12  ;;  %1990 = vmatprep.subr.bf16.mxu0 %v2292_v13  ;;  %v2308_v29 = vld [vmem:[%s2644_s19 + $0x70] sm:$0xff]   ;;  %v2312_v35 = vld [vmem:[%s2644_s19 + $0x78] sm:$0xff]   ;;  %v389_v9 = vld [vmem:[%s2630_s4 + $0x60] sm:$0xff]  ;;  %v438_v13 = vunpack.c.h.s8.bf16 %v390_v3 }
  0x70   : > { %2102 = vmatprep.subr.bf16.mxu1 %v2293_v14  ;;  %v2309_v30 = vld [vmem:[%s2644_s19 + $0xf0] sm:$0xff]   ;;  %v2313_v36 = vld [vmem:[%s2644_s19 + $0xf8] sm:$0xff]   ;;  %v433_v11 = vunpack.c.l.s8.bf16 %v389_v9  ;;  %v440_v14 = vunpack.c.h.s8.bf16 %v392_v4 }
  0x71   : > { %v2310_v31 = vld [vmem:[%s2644_s19 + $0x30] sm:$0xff]   ;;  %v2314_v37 = vld [vmem:[%s2644_s19 + $0x38] sm:$0xff]  }
  0x72   : > { %1991 = vmatpush3.bf16.msra.mxu0 %v2294_v15  ;;  %v2311_v33 = vld [vmem:[%s2644_s19 + $0xb0] sm:$0xff]   ;;  %v2315_v38 = vld [vmem:[%s2644_s19 + $0xb8] sm:$0xff]   ;;  %v394_v15 = vld [vmem:[%s2630_s4 + $0x88] sm:$0xff] }
  0x73   : > { %2103 = vmatpush3.bf16.msra.mxu1 %v2295_v16  ;;  %1992 = vmatprep.subr.bf16.mxu0 %v2296_v17  ;;  %v391_v10 = vld [vmem:[%s2630_s4 + $0x70] sm:$0xff]  ;;  %v396_v16 = vld [vmem:[%s2630_s4 + $0x98] sm:$0xff]  ;;  %v437_v17 = vunpack.c.h.s8.bf16 %v389_v9 }
  0x74   : > { %2104 = vmatprep.subr.bf16.mxu1 %v2297_v18  ;;  %v435_v12 = vunpack.c.l.s8.bf16 %v391_v10  ;;  %v439_v18 = vunpack.c.h.s8.bf16 %v391_v10  ;;  %v550_v10 = vld [vmem:[#allocation2] sm:$0xff] }
  0x76   : > { %1993 = vmatpush3.bf16.msra.mxu0 %v2298_v19  ;;  %v442_v19 = vunpack.c.l.s8.bf16 %v394_v15 }
  0x77   : > { %2105 = vmatpush3.bf16.msra.mxu1 %v2299_v20  ;;  %1994 = vmatprep.subr.bf16.mxu0 %v2300_v21  ;;  %v444_v20 = vunpack.c.l.s8.bf16 %v396_v16  ;;  %v393_v21 = vld [vmem:[%s2630_s4 + $0x80] sm:$0xff] }
  0x78   : > { %2106 = vmatprep.subr.bf16.mxu1 %v2301_v22  ;;  %v395_v22 = vld [vmem:[%s2630_s4 + $0x90] sm:$0xff] }
  0x7a   : > { %1995 = vmatpush3.bf16.msra.mxu0 %v2302_v23  ;;  %v441_v23 = vunpack.c.l.s8.bf16 %v393_v21 }
  0x7b   : > { %2107 = vmatpush3.bf16.msra.mxu1 %v2303_v24  ;;  %1996 = vmatprep.subr.bf16.mxu0 %v2304_v25  ;;  %v443_v24 = vunpack.c.l.s8.bf16 %v395_v22  ;;  %v446_v25 = vunpack.c.h.s8.bf16 %v394_v15  ;;  %v551_v15 = vld [vmem:[#allocation2 + $0x8] sm:$0xff] }
  0x7c   : > { %2108 = vmatprep.subr.bf16.mxu1 %v2305_v26  ;;  %v448_v26 = vunpack.c.h.s8.bf16 %v396_v16 }
  0x7e   : > { %1997 = vmatpush3.bf16.msra.mxu0 %v2306_v27  ;;  %v398_v27 = vld [vmem:[%s2630_s4 + $0xa8] sm:$0xff] }
  0x7f   : > { %2109 = vmatpush3.bf16.msra.mxu1 %v2307_v28  ;;  %1998 = vmatprep.subr.bf16.mxu0 %v2308_v29  ;;  %v400_v28 = vld [vmem:[%s2630_s4 + $0xb8] sm:$0xff]  ;;  %v445_v29 = vunpack.c.h.s8.bf16 %v393_v21 }
  0x80   : > { %2110 = vmatprep.subr.bf16.mxu1 %v2309_v30  ;;  %v447_v30 = vunpack.c.h.s8.bf16 %v395_v22  ;;  %v452_v32 = vunpack.c.l.s8.bf16 %v400_v28 }
  0x82   : > { %1999 = vmatpush3.bf16.msra.mxu0 %v2310_v31  ;;  %v450_v31 = vunpack.c.l.s8.bf16 %v398_v27 }
  0x83   : > { %2111 = vmatpush3.bf16.msra.mxu1 %v2311_v33  ;;  %2000 = vmatprep.subr.bf16.mxu0 %v2312_v35  ;;  %v397_v33 = vld [vmem:[%s2630_s4 + $0xa0] sm:$0xff] }
  0x84   : > { %2112 = vmatprep.subr.bf16.mxu1 %v2313_v36  ;;  %v449_v35 = vunpack.c.l.s8.bf16 %v397_v33  ;;  %v451_v36 = vunpack.c.l.s8.bf16 %v399_v34 }
  0x86   : > { %2001 = vmatpush3.bf16.msra.mxu0 %v2314_v37  ;;  %v454_v37 = vunpack.c.h.s8.bf16 %v398_v27 }
  0x87   : > { %2113 = vmatpush3.bf16.msra.mxu1 %v2315_v38  ;;  %v456_v38 = vunpack.c.h.s8.bf16 %v400_v28  ;;  %v552_v28 = vld [vmem:[#allocation2 + $0x10] sm:$0xff] }
  0x89   : > { %807 = vmatmul.mubr.bf16.vlgmr.msra.gmra.mrb[0].mxu0 %v409_v39  ;;  %v402_v39 = vld [vmem:[%s2630_s4 + $0xc8] sm:$0xff] }
  0x8a   : > { %968 = vmatmul.mubr.bf16.vlgmr.msra.gmra.mrb[0].mxu1 %v411_v41  ;;  %814 = vmatprep.mubr.bf16.mxu0 %v414_v40  ;;  %v404_v40 = vld [vmem:[%s2630_s4 + $0xd8] sm:$0xff]  ;;  %v453_v41 = vunpack.c.h.s8.bf16 %v397_v33  ;;  %v458_v43 = vunpack.c.l.s8.bf16 %v402_v39  ;;  %v462_v49 = vunpack.c.h.s8.bf16 %v402_v39 }
  0x8b   : > { %975 = vmatprep.mubr.bf16.mxu1 %v416_v42  ;;  %v455_v42 = vunpack.c.h.s8.bf16 %v399_v34  ;;  %v460_v44 = vunpack.c.l.s8.bf16 %v404_v40  ;;  %v464_v50 = vunpack.c.h.s8.bf16 %v404_v40  ;;  %v553_v33 = vld [vmem:[#allocation2 + $0x18] sm:$0xff] }
  0x91   : > { %815 = vmatmul.mubr.bf16.gmra.mrb[4].mxu0 %v413_v45  ;;  %v401_v45 = vld [vmem:[%s2630_s4 + $0xc0] sm:$0xff] }
  0x92   : > { %976 = vmatmul.mubr.bf16.gmra.mrb[4].mxu1 %v415_v46  ;;  %822 = vmatprep.mubr.bf16.mxu0 %v418_v47  ;;  %v403_v46 = vld [vmem:[%s2630_s4 + $0xd0] sm:$0xff]  ;;  %v457_v47 = vunpack.c.l.s8.bf16 %v401_v45 }
  0x93   : > { %983 = vmatprep.mubr.bf16.mxu1 %v420_v48  ;;  %v459_v48 = vunpack.c.l.s8.bf16 %v403_v46 }
  0x99   : > { %823 = vmatmul.mubr.bf16.gmra.mrb[8].mxu0 %v417_v51  ;;  %v406_v51 = vld [vmem:[%s2630_s4 + $0xe8] sm:$0xff] }
  0x9a   : > { %984 = vmatmul.mubr.bf16.gmra.mrb[8].mxu1 %v419_v52  ;;  %830 = vmatprep.mubr.bf16.mxu0 %v422_v53  ;;  %v408_v52 = vld [vmem:[%s2630_s4 + $0xf8] sm:$0xff]  ;;  %v461_v53 = vunpack.c.h.s8.bf16 %v401_v45  ;;  %v466_v55 = vunpack.c.l.s8.bf16 %v406_v51  ;;  %v470_v61 = vunpack.c.h.s8.bf16 %v406_v51  ;;  %v555_v51 = vld [vmem:[#allocation2 + $0x28] sm:$0xff] }
  0x9b   : > { %991 = vmatprep.mubr.bf16.mxu1 %v424_v54  ;;  %v463_v54 = vunpack.c.h.s8.bf16 %v403_v46  ;;  %v468_v56 = vunpack.c.l.s8.bf16 %v408_v52  ;;  %v472_v62 = vunpack.c.h.s8.bf16 %v408_v52  ;;  %v554_v46 = vld [vmem:[#allocation2 + $0x20] sm:$0xff] }
  0xa1   : > { %831 = vmatmul.mubr.bf16.gmra.mrb[12].mxu0 %v421_v57  ;;  %v405_v57 = vld [vmem:[%s2630_s4 + $0xe0] sm:$0xff] }
  0xa2   : > { %992 = vmatmul.mubr.bf16.gmra.mrb[12].mxu1 %v423_v58  ;;  %838 = vmatprep.mubr.bf16.mxu0 %v426_v59  ;;  %v407_v58 = vld [vmem:[%s2630_s4 + $0xf0] sm:$0xff]  ;;  %v465_v59 = vunpack.c.l.s8.bf16 %v405_v57 }
  0xa3   : > { %999 = vmatprep.mubr.bf16.mxu1 %v428_v60  ;;  %v467_v60 = vunpack.c.l.s8.bf16 %v407_v58 }
  0xa9   : > { %839 = vmatmul.mubr.bf16.gmra.mrb[16].mxu0 %v425_v63  ;;  %v469_v63 = vunpack.c.h.s8.bf16 %v405_v57 }
  0xaa   : > { %1000 = vmatmul.mubr.bf16.gmra.mrb[16].mxu1 %v427_v0  ;;  %846 = vmatprep.mubr.bf16.mxu0 %v430_v1  ;;  %v471_v0 = vunpack.c.h.s8.bf16 %v407_v58 }
  0xab   : > { %1007 = vmatprep.mubr.bf16.mxu1 %v432_v2 }
  0xb1   : > { %847 = vmatmul.mubr.bf16.gmra.mrb[20].mxu0 %v429_v5 }
  0xb2   : > { %1008 = vmatmul.mubr.bf16.gmra.mrb[20].mxu1 %v431_v6  ;;  %854 = vmatprep.mubr.bf16.mxu0 %v434_v7 }
  0xb3   : > { %1015 = vmatprep.mubr.bf16.mxu1 %v436_v8 }
  0xb9   : > { %855 = vmatmul.mubr.bf16.gmra.mrb[24].mxu0 %v433_v11 }
  0xba   : > { %1016 = vmatmul.mubr.bf16.gmra.mrb[24].mxu1 %v435_v12  ;;  %862 = vmatprep.mubr.bf16.mxu0 %v438_v13 }
  0xbb   : > { %1023 = vmatprep.mubr.bf16.mxu1 %v440_v14 }
  0xc1   : > { %863 = vmatmul.mubr.bf16.gmra.mrb[28].mxu0 %v437_v17 }
  0xc2   : > { %1024 = vmatmul.mubr.bf16.gmra.mrb[28].mxu1 %v439_v18  ;;  %870 = vmatprep.mubr.bf16.mxu0 %v442_v19 }
  0xc3   : > { %1031 = vmatprep.mubr.bf16.mxu1 %v444_v20 }
  0xc9   : > { %871 = vmatmul.mubr.bf16.gmra.mrb[32].mxu0 %v441_v23 }
  0xca   : > { %1032 = vmatmul.mubr.bf16.gmra.mrb[32].mxu1 %v443_v24  ;;  %878 = vmatprep.mubr.bf16.mxu0 %v446_v25 }
  0xcb   : > { %1039 = vmatprep.mubr.bf16.mxu1 %v448_v26 }
  0xd1   : > { %879 = vmatmul.mubr.bf16.gmra.mrb[36].mxu0 %v445_v29 }
  0xd2   : > { %1040 = vmatmul.mubr.bf16.gmra.mrb[36].mxu1 %v447_v30  ;;  %886 = vmatprep.mubr.bf16.mxu0 %v450_v31 }
  0xd3   : > { %1047 = vmatprep.mubr.bf16.mxu1 %v452_v32 }
  0xd9   : > { %887 = vmatmul.mubr.bf16.gmra.mrb[40].mxu0 %v449_v35 }
  0xda   : > { %1048 = vmatmul.mubr.bf16.gmra.mrb[40].mxu1 %v451_v36  ;;  %894 = vmatprep.mubr.bf16.mxu0 %v454_v37 }
  0xdb   : > { %1055 = vmatprep.mubr.bf16.mxu1 %v456_v38 }
  0xe1   : > { %895 = vmatmul.mubr.bf16.gmra.mrb[44].mxu0 %v453_v41 }
  0xe2   : > { %1056 = vmatmul.mubr.bf16.gmra.mrb[44].mxu1 %v455_v42  ;;  %902 = vmatprep.mubr.bf16.mxu0 %v458_v43 }
  0xe3   : > { %1063 = vmatprep.mubr.bf16.mxu1 %v460_v44 }
  0xe9   : > { %903 = vmatmul.mubr.bf16.gmra.mrb[48].mxu0 %v457_v47 }
  0xea   : > { %1064 = vmatmul.mubr.bf16.gmra.mrb[48].mxu1 %v459_v48  ;;  %910 = vmatprep.mubr.bf16.mxu0 %v462_v49 }
  0xeb   : > { %1071 = vmatprep.mubr.bf16.mxu1 %v464_v50 }
  0xf1   : > { %911 = vmatmul.mubr.bf16.gmra.mrb[52].mxu0 %v461_v53 }
  0xf2   : > { %1072 = vmatmul.mubr.bf16.gmra.mrb[52].mxu1 %v463_v54  ;;  %918 = vmatprep.mubr.bf16.mxu0 %v466_v55 }
  0xf3   : > { %1079 = vmatprep.mubr.bf16.mxu1 %v468_v56 }
  0xf9   : > { %919 = vmatmul.mubr.bf16.gmra.mrb[56].mxu0 %v465_v59 }
  0xfa   : > { %1080 = vmatmul.mubr.bf16.gmra.mrb[56].mxu1 %v467_v60  ;;  %926 = vmatprep.mubr.bf16.mxu0 %v470_v61 }
  0xfb   : > { %1087 = vmatprep.mubr.bf16.mxu1 %v472_v62 }
 0x101   : > { %927 = vmatmul.mubr.bf16.gmra.mrb[60].mxu0 %v469_v63 }
 0x102   : > { %1088 = vmatmul.mubr.bf16.gmra.mrb[60].mxu1 %v471_v0  ;;  %v556_v0 = vld [vmem:[#allocation2 + $0x30] sm:$0xff] }
 0x15c   : > { %v2002_v1 = vpop.f32.mrb[0].mxu0 }
 0x15d   : > { %v2114_v2 = vpop.f32.mrb[0].mxu1  ;;  %v2003_v3 = vpop.f32.mrb[1].mxu0 }
 0x15e   : > { %v2004_v4 = vadd.f32 %v2003_v3, %v2002_v1  ;;  %v2115_v5 = vpop.f32.mrb[1].mxu1  ;;  %v2005_v6 = vpop.f32.mrb[2].mxu0 }
 0x15f   : > { %v2116_v7 = vadd.f32 %v2115_v5, %v2114_v2  ;;  %v2117_v8 = vpop.f32.mrb[2].mxu1  ;;  %v2006_v9 = vpop.f32.mrb[3].mxu0  ;;  %v557_v5 = vld [vmem:[#allocation2 + $0x38] sm:$0xff] }
 0x160   : > { %v2007_v11 = vadd.f32 %v2006_v9, %v2005_v6  ;;  %v2118_v12 = vpop.f32.mrb[3].mxu1 }
 0x161   : > { %v970_v13 = vadd.f32 %v2116_v7, %v2004_v4  ;;  %v2119_v14 = vadd.f32 %v2118_v12, %v2117_v8 }
 0x163   : > { %v1096_v16 = vadd.f32 %v970_v13, %v550_v10  ;;  %v973_v17 = vadd.f32 %v2119_v14, %v2007_v11 }
 0x164   : > { %v2008_v18 = vpop.f32.mrb[4].mxu0 }
 0x165   : > { %1128 = vst [vmem:[#allocation2] sm:$0xff] %v1096_v16  ;;  %v1097_v19 = vadd.f32 %v973_v17, %v551_v15  ;;  %v2120_v20 = vpop.f32.mrb[4].mxu1  ;;  %v2009_v21 = vpop.f32.mrb[5].mxu0 }
 0x166   : > { %v2010_v22 = vadd.f32 %v2009_v21, %v2008_v18  ;;  %v2121_v23 = vpop.f32.mrb[5].mxu1  ;;  %v2011_v24 = vpop.f32.mrb[6].mxu0  ;;  %v558_v18 = vld [vmem:[#allocation2 + $0x40] sm:$0xff] }
 0x167   : > { %1129 = vst [vmem:[#allocation2 + $0x8] sm:$0xff] %v1097_v19  ;;  %v2122_v25 = vadd.f32 %v2121_v23, %v2120_v20  ;;  %v2123_v26 = vpop.f32.mrb[6].mxu1  ;;  %v2012_v27 = vpop.f32.mrb[7].mxu0  ;;  %v559_v23 = vld [vmem:[#allocation2 + $0x48] sm:$0xff] }
 0x168   : > { %v2013_v29 = vadd.f32 %v2012_v27, %v2011_v24  ;;  %v2124_v30 = vpop.f32.mrb[7].mxu1 }
 0x169   : > { %v978_v31 = vadd.f32 %v2122_v25, %v2010_v22  ;;  %v2125_v32 = vadd.f32 %v2124_v30, %v2123_v26 }
 0x16b   : > { %v1098_v34 = vadd.f32 %v978_v31, %v552_v28  ;;  %v981_v35 = vadd.f32 %v2125_v32, %v2013_v29 }
 0x16c   : > { %v2014_v36 = vpop.f32.mrb[8].mxu0 }
 0x16d   : > { %1130 = vst [vmem:[#allocation2 + $0x10] sm:$0xff] %v1098_v34  ;;  %v1099_v37 = vadd.f32 %v981_v35, %v553_v33  ;;  %v2126_v38 = vpop.f32.mrb[8].mxu1  ;;  %v2015_v39 = vpop.f32.mrb[9].mxu0 }
 0x16e   : > { %v2016_v40 = vadd.f32 %v2015_v39, %v2014_v36  ;;  %v2127_v41 = vpop.f32.mrb[9].mxu1  ;;  %v2017_v42 = vpop.f32.mrb[10].mxu0  ;;  %v560_v36 = vld [vmem:[#allocation2 + $0x50] sm:$0xff] }
 0x16f   : > { %1131 = vst [vmem:[#allocation2 + $0x18] sm:$0xff] %v1099_v37  ;;  %v2128_v43 = vadd.f32 %v2127_v41, %v2126_v38  ;;  %v2129_v44 = vpop.f32.mrb[10].mxu1  ;;  %v2018_v45 = vpop.f32.mrb[11].mxu0  ;;  %v561_v41 = vld [vmem:[#allocation2 + $0x58] sm:$0xff] }
 0x170   : > { %v2019_v47 = vadd.f32 %v2018_v45, %v2017_v42  ;;  %v2130_v48 = vpop.f32.mrb[11].mxu1 }
 0x171   : > { %v986_v49 = vadd.f32 %v2128_v43, %v2016_v40  ;;  %v2131_v50 = vadd.f32 %v2130_v48, %v2129_v44 }
 0x173   : > { %v1100_v52 = vadd.f32 %v986_v49, %v554_v46  ;;  %v989_v53 = vadd.f32 %v2131_v50, %v2019_v47 }
 0x174   : > { %v2020_v54 = vpop.f32.mrb[12].mxu0 }
 0x175   : > { %1132 = vst [vmem:[#allocation2 + $0x20] sm:$0xff] %v1100_v52  ;;  %v1101_v55 = vadd.f32 %v989_v53, %v555_v51  ;;  %v2132_v56 = vpop.f32.mrb[12].mxu1  ;;  %v2021_v57 = vpop.f32.mrb[13].mxu0 }
 0x176   : > { %v2022_v58 = vadd.f32 %v2021_v57, %v2020_v54  ;;  %v2133_v59 = vpop.f32.mrb[13].mxu1  ;;  %v2023_v60 = vpop.f32.mrb[14].mxu0  ;;  %v562_v54 = vld [vmem:[#allocation2 + $0x60] sm:$0xff] }
 0x177   : > { %1133 = vst [vmem:[#allocation2 + $0x28] sm:$0xff] %v1101_v55  ;;  %v2134_v61 = vadd.f32 %v2133_v59, %v2132_v56  ;;  %v2135_v62 = vpop.f32.mrb[14].mxu1  ;;  %v2024_v63 = vpop.f32.mrb[15].mxu0  ;;  %v563_v59 = vld [vmem:[#allocation2 + $0x68] sm:$0xff] }
 0x178   : > { %v2025_v1 = vadd.f32 %v2024_v63, %v2023_v60  ;;  %v2136_v2 = vpop.f32.mrb[15].mxu1 }
 0x179   : > { %v994_v3 = vadd.f32 %v2134_v61, %v2022_v58  ;;  %v2137_v4 = vadd.f32 %v2136_v2, %v2135_v62 }
 0x17b   : > { %v1102_v6 = vadd.f32 %v994_v3, %v556_v0  ;;  %v997_v7 = vadd.f32 %v2137_v4, %v2025_v1 }
 0x17c   : > { %v2026_v8 = vpop.f32.mrb[16].mxu0 }
 0x17d   : > { %1134 = vst [vmem:[#allocation2 + $0x30] sm:$0xff] %v1102_v6  ;;  %v1103_v9 = vadd.f32 %v997_v7, %v557_v5  ;;  %v2138_v10 = vpop.f32.mrb[16].mxu1  ;;  %v2027_v11 = vpop.f32.mrb[17].mxu0 }
 0x17e   : > { %v2028_v12 = vadd.f32 %v2027_v11, %v2026_v8  ;;  %v2139_v13 = vpop.f32.mrb[17].mxu1  ;;  %v2029_v14 = vpop.f32.mrb[18].mxu0  ;;  %v564_v8 = vld [vmem:[#allocation2 + $0x70] sm:$0xff] }
 0x17f   : > { %1135 = vst [vmem:[#allocation2 + $0x38] sm:$0xff] %v1103_v9  ;;  %v2140_v15 = vadd.f32 %v2139_v13, %v2138_v10  ;;  %v2141_v16 = vpop.f32.mrb[18].mxu1  ;;  %v2030_v17 = vpop.f32.mrb[19].mxu0  ;;  %v565_v13 = vld [vmem:[#allocation2 + $0x78] sm:$0xff] }
 0x180   : > { %v2031_v19 = vadd.f32 %v2030_v17, %v2029_v14  ;;  %v2142_v20 = vpop.f32.mrb[19].mxu1 }
 0x181   : > { %v1002_v21 = vadd.f32 %v2140_v15, %v2028_v12  ;;  %v2143_v22 = vadd.f32 %v2142_v20, %v2141_v16 }
 0x183   : > { %v1104_v24 = vadd.f32 %v1002_v21, %v558_v18  ;;  %v1005_v25 = vadd.f32 %v2143_v22, %v2031_v19 }
 0x184   : > { %v2032_v26 = vpop.f32.mrb[20].mxu0 }
 0x185   : > { %1136 = vst [vmem:[#allocation2 + $0x40] sm:$0xff] %v1104_v24  ;;  %v1105_v27 = vadd.f32 %v1005_v25, %v559_v23  ;;  %v2144_v28 = vpop.f32.mrb[20].mxu1  ;;  %v2033_v29 = vpop.f32.mrb[21].mxu0 }
 0x186   : > { %v2034_v30 = vadd.f32 %v2033_v29, %v2032_v26  ;;  %v2145_v31 = vpop.f32.mrb[21].mxu1  ;;  %v2035_v32 = vpop.f32.mrb[22].mxu0  ;;  %v566_v26 = vld [vmem:[#allocation2 + $0x80] sm:$0xff] }
 0x187   : > { %1137 = vst [vmem:[#allocation2 + $0x48] sm:$0xff] %v1105_v27  ;;  %v2146_v33 = vadd.f32 %v2145_v31, %v2144_v28  ;;  %v2147_v34 = vpop.f32.mrb[22].mxu1  ;;  %v2036_v35 = vpop.f32.mrb[23].mxu0  ;;  %v567_v31 = vld [vmem:[#allocation2 + $0x88] sm:$0xff] }
 0x188   : > { %v2037_v37 = vadd.f32 %v2036_v35, %v2035_v32  ;;  %v2148_v38 = vpop.f32.mrb[23].mxu1 }
 0x189   : > { %v1010_v39 = vadd.f32 %v2146_v33, %v2034_v30  ;;  %v2149_v40 = vadd.f32 %v2148_v38, %v2147_v34 }
 0x18b   : > { %v1106_v42 = vadd.f32 %v1010_v39, %v560_v36  ;;  %v1013_v43 = vadd.f32 %v2149_v40, %v2037_v37 }
 0x18c   : > { %v2038_v44 = vpop.f32.mrb[24].mxu0 }
 0x18d   : > { %1138 = vst [vmem:[#allocation2 + $0x50] sm:$0xff] %v1106_v42  ;;  %v1107_v45 = vadd.f32 %v1013_v43, %v561_v41  ;;  %v2150_v46 = vpop.f32.mrb[24].mxu1  ;;  %v2039_v47 = vpop.f32.mrb[25].mxu0 }
 0x18e   : > { %v2040_v48 = vadd.f32 %v2039_v47, %v2038_v44  ;;  %v2151_v49 = vpop.f32.mrb[25].mxu1  ;;  %v2041_v50 = vpop.f32.mrb[26].mxu0  ;;  %v568_v44 = vld [vmem:[#allocation2 + $0x90] sm:$0xff] }
 0x18f   : > { %1139 = vst [vmem:[#allocation2 + $0x58] sm:$0xff] %v1107_v45  ;;  %v2152_v51 = vadd.f32 %v2151_v49, %v2150_v46  ;;  %v2153_v52 = vpop.f32.mrb[26].mxu1  ;;  %v2042_v53 = vpop.f32.mrb[27].mxu0  ;;  %v569_v49 = vld [vmem:[#allocation2 + $0x98] sm:$0xff] }
 0x190   : > { %v2043_v55 = vadd.f32 %v2042_v53, %v2041_v50  ;;  %v2154_v56 = vpop.f32.mrb[27].mxu1 }
 0x191   : > { %v1018_v57 = vadd.f32 %v2152_v51, %v2040_v48  ;;  %v2155_v58 = vadd.f32 %v2154_v56, %v2153_v52 }
 0x193   : > { %v1108_v60 = vadd.f32 %v1018_v57, %v562_v54  ;;  %v1021_v61 = vadd.f32 %v2155_v58, %v2043_v55 }
 0x194   : > { %v2044_v62 = vpop.f32.mrb[28].mxu0 }
 0x195   : > { %1140 = vst [vmem:[#allocation2 + $0x60] sm:$0xff] %v1108_v60  ;;  %v1109_v63 = vadd.f32 %v1021_v61, %v563_v59  ;;  %v2156_v0 = vpop.f32.mrb[28].mxu1  ;;  %v2045_v1 = vpop.f32.mrb[29].mxu0 }
 0x196   : > { %v2046_v2 = vadd.f32 %v2045_v1, %v2044_v62  ;;  %v2157_v3 = vpop.f32.mrb[29].mxu1  ;;  %v2047_v4 = vpop.f32.mrb[30].mxu0  ;;  %v570_v62 = vld [vmem:[#allocation2 + $0xa0] sm:$0xff] }
 0x197   : > { %1141 = vst [vmem:[#allocation2 + $0x68] sm:$0xff] %v1109_v63  ;;  %v2158_v5 = vadd.f32 %v2157_v3, %v2156_v0  ;;  %v2159_v6 = vpop.f32.mrb[30].mxu1  ;;  %v2048_v7 = vpop.f32.mrb[31].mxu0  ;;  %v571_v3 = vld [vmem:[#allocation2 + $0xa8] sm:$0xff] }
 0x198   : > { %v2049_v9 = vadd.f32 %v2048_v7, %v2047_v4  ;;  %v2160_v10 = vpop.f32.mrb[31].mxu1 }
 0x199   : > { %v1026_v11 = vadd.f32 %v2158_v5, %v2046_v2  ;;  %v2161_v12 = vadd.f32 %v2160_v10, %v2159_v6 }
 0x19b   : > { %v1110_v14 = vadd.f32 %v1026_v11, %v564_v8  ;;  %v1029_v15 = vadd.f32 %v2161_v12, %v2049_v9 }
 0x19c   : > { %v2050_v16 = vpop.f32.mrb[32].mxu0 }
 0x19d   : > { %1142 = vst [vmem:[#allocation2 + $0x70] sm:$0xff] %v1110_v14  ;;  %v1111_v17 = vadd.f32 %v1029_v15, %v565_v13  ;;  %v2162_v18 = vpop.f32.mrb[32].mxu1  ;;  %v2051_v19 = vpop.f32.mrb[33].mxu0 }
 0x19e   : > { %v2052_v20 = vadd.f32 %v2051_v19, %v2050_v16  ;;  %v2163_v21 = vpop.f32.mrb[33].mxu1  ;;  %v2053_v22 = vpop.f32.mrb[34].mxu0  ;;  %v572_v16 = vld [vmem:[#allocation2 + $0xb0] sm:$0xff] }
 0x19f   : > { %1143 = vst [vmem:[#allocation2 + $0x78] sm:$0xff] %v1111_v17  ;;  %v2164_v23 = vadd.f32 %v2163_v21, %v2162_v18  ;;  %v2165_v24 = vpop.f32.mrb[34].mxu1  ;;  %v2054_v25 = vpop.f32.mrb[35].mxu0  ;;  %v573_v21 = vld [vmem:[#allocation2 + $0xb8] sm:$0xff] }
 0x1a0   : > { %v2055_v27 = vadd.f32 %v2054_v25, %v2053_v22  ;;  %v2166_v28 = vpop.f32.mrb[35].mxu1 }
 0x1a1   : > { %v1034_v29 = vadd.f32 %v2164_v23, %v2052_v20  ;;  %v2167_v30 = vadd.f32 %v2166_v28, %v2165_v24 }
 0x1a3   : > { %v1112_v32 = vadd.f32 %v1034_v29, %v566_v26  ;;  %v1037_v33 = vadd.f32 %v2167_v30, %v2055_v27 }
 0x1a4   : > { %v2056_v34 = vpop.f32.mrb[36].mxu0 }
 0x1a5   : > { %1144 = vst [vmem:[#allocation2 + $0x80] sm:$0xff] %v1112_v32  ;;  %v1113_v35 = vadd.f32 %v1037_v33, %v567_v31  ;;  %v2168_v36 = vpop.f32.mrb[36].mxu1  ;;  %v2057_v37 = vpop.f32.mrb[37].mxu0 }
 0x1a6   : > { %v2058_v38 = vadd.f32 %v2057_v37, %v2056_v34  ;;  %v2169_v39 = vpop.f32.mrb[37].mxu1  ;;  %v2059_v40 = vpop.f32.mrb[38].mxu0  ;;  %v574_v34 = vld [vmem:[#allocation2 + $0xc0] sm:$0xff] }
 0x1a7   : > { %1145 = vst [vmem:[#allocation2 + $0x88] sm:$0xff] %v1113_v35  ;;  %v2170_v41 = vadd.f32 %v2169_v39, %v2168_v36  ;;  %v2171_v42 = vpop.f32.mrb[38].mxu1  ;;  %v2060_v43 = vpop.f32.mrb[39].mxu0  ;;  %v575_v39 = vld [vmem:[#allocation2 + $0xc8] sm:$0xff] }
 0x1a8   : > { %v2061_v45 = vadd.f32 %v2060_v43, %v2059_v40  ;;  %v2172_v46 = vpop.f32.mrb[39].mxu1 }
 0x1a9   : > { %v1042_v47 = vadd.f32 %v2170_v41, %v2058_v38  ;;  %v2173_v48 = vadd.f32 %v2172_v46, %v2171_v42 }
 0x1ab   : > { %v1114_v50 = vadd.f32 %v1042_v47, %v568_v44  ;;  %v1045_v51 = vadd.f32 %v2173_v48, %v2061_v45 }
 0x1ac   : > { %v2062_v52 = vpop.f32.mrb[40].mxu0 }
 0x1ad   : > { %1146 = vst [vmem:[#allocation2 + $0x90] sm:$0xff] %v1114_v50  ;;  %v1115_v53 = vadd.f32 %v1045_v51, %v569_v49  ;;  %v2174_v54 = vpop.f32.mrb[40].mxu1  ;;  %v2063_v55 = vpop.f32.mrb[41].mxu0 }
 0x1ae   : > { %v2064_v56 = vadd.f32 %v2063_v55, %v2062_v52  ;;  %v2175_v57 = vpop.f32.mrb[41].mxu1  ;;  %v2065_v58 = vpop.f32.mrb[42].mxu0  ;;  %v576_v52 = vld [vmem:[#allocation2 + $0xd0] sm:$0xff] }
 0x1af   : > { %1147 = vst [vmem:[#allocation2 + $0x98] sm:$0xff] %v1115_v53  ;;  %v2176_v59 = vadd.f32 %v2175_v57, %v2174_v54  ;;  %v2177_v60 = vpop.f32.mrb[42].mxu1  ;;  %v2066_v61 = vpop.f32.mrb[43].mxu0  ;;  %v577_v57 = vld [vmem:[#allocation2 + $0xd8] sm:$0xff] }
 0x1b0   : > { %v2067_v63 = vadd.f32 %v2066_v61, %v2065_v58  ;;  %v2178_v0 = vpop.f32.mrb[43].mxu1 }
 0x1b1   : > { %v1050_v1 = vadd.f32 %v2176_v59, %v2064_v56  ;;  %v2179_v2 = vadd.f32 %v2178_v0, %v2177_v60 }
 0x1b3   : > { %v1116_v4 = vadd.f32 %v1050_v1, %v570_v62  ;;  %v1053_v5 = vadd.f32 %v2179_v2, %v2067_v63 }
 0x1b4   : > { %v2068_v6 = vpop.f32.mrb[44].mxu0 }
 0x1b5   : > { %1148 = vst [vmem:[#allocation2 + $0xa0] sm:$0xff] %v1116_v4  ;;  %v1117_v7 = vadd.f32 %v1053_v5, %v571_v3  ;;  %v2180_v8 = vpop.f32.mrb[44].mxu1  ;;  %v2069_v9 = vpop.f32.mrb[45].mxu0 }
 0x1b6   : > { %v2070_v10 = vadd.f32 %v2069_v9, %v2068_v6  ;;  %v2181_v11 = vpop.f32.mrb[45].mxu1  ;;  %v2071_v12 = vpop.f32.mrb[46].mxu0  ;;  %v578_v6 = vld [vmem:[#allocation2 + $0xe0] sm:$0xff] }
 0x1b7   : > { %1149 = vst [vmem:[#allocation2 + $0xa8] sm:$0xff] %v1117_v7  ;;  %v2182_v13 = vadd.f32 %v2181_v11, %v2180_v8  ;;  %v2183_v14 = vpop.f32.mrb[46].mxu1  ;;  %v2072_v15 = vpop.f32.mrb[47].mxu0  ;;  %v579_v11 = vld [vmem:[#allocation2 + $0xe8] sm:$0xff] }
 0x1b8   : > { %v2073_v17 = vadd.f32 %v2072_v15, %v2071_v12  ;;  %v2184_v18 = vpop.f32.mrb[47].mxu1 }
 0x1b9   : > { %v1058_v19 = vadd.f32 %v2182_v13, %v2070_v10  ;;  %v2185_v20 = vadd.f32 %v2184_v18, %v2183_v14 }
 0x1bb   : > { %v1118_v22 = vadd.f32 %v1058_v19, %v572_v16  ;;  %v1061_v23 = vadd.f32 %v2185_v20, %v2073_v17 }
 0x1bc   : > { %v2074_v24 = vpop.f32.mrb[48].mxu0 }
 0x1bd   : > { %1150 = vst [vmem:[#allocation2 + $0xb0] sm:$0xff] %v1118_v22  ;;  %v1119_v25 = vadd.f32 %v1061_v23, %v573_v21  ;;  %v2186_v26 = vpop.f32.mrb[48].mxu1  ;;  %v2075_v27 = vpop.f32.mrb[49].mxu0 }
 0x1be   : > { %v2076_v28 = vadd.f32 %v2075_v27, %v2074_v24  ;;  %v2187_v29 = vpop.f32.mrb[49].mxu1  ;;  %v2077_v30 = vpop.f32.mrb[50].mxu0  ;;  %v580_v24 = vld [vmem:[#allocation2 + $0xf0] sm:$0xff] }
 0x1bf   : > { %1151 = vst [vmem:[#allocation2 + $0xb8] sm:$0xff] %v1119_v25  ;;  %v2188_v31 = vadd.f32 %v2187_v29, %v2186_v26  ;;  %v2189_v32 = vpop.f32.mrb[50].mxu1  ;;  %v2078_v33 = vpop.f32.mrb[51].mxu0  ;;  %v581_v29 = vld [vmem:[#allocation2 + $0xf8] sm:$0xff] }
 0x1c0   : > { %v2079_v35 = vadd.f32 %v2078_v33, %v2077_v30  ;;  %v2190_v36 = vpop.f32.mrb[51].mxu1 }
 0x1c1   : > { %v1066_v37 = vadd.f32 %v2188_v31, %v2076_v28  ;;  %v2191_v38 = vadd.f32 %v2190_v36, %v2189_v32 }
 0x1c3   : > { %v1120_v40 = vadd.f32 %v1066_v37, %v574_v34  ;;  %v1069_v41 = vadd.f32 %v2191_v38, %v2079_v35 }
 0x1c4   : > { %v2080_v42 = vpop.f32.mrb[52].mxu0 }
 0x1c5   : > { %1152 = vst [vmem:[#allocation2 + $0xc0] sm:$0xff] %v1120_v40  ;;  %v1121_v43 = vadd.f32 %v1069_v41, %v575_v39  ;;  %v2192_v44 = vpop.f32.mrb[52].mxu1  ;;  %v2081_v45 = vpop.f32.mrb[53].mxu0 }
 0x1c6   : > { %v2082_v46 = vadd.f32 %v2081_v45, %v2080_v42  ;;  %v2193_v47 = vpop.f32.mrb[53].mxu1  ;;  %v2083_v48 = vpop.f32.mrb[54].mxu0 }
 0x1c7   : > { %1153 = vst [vmem:[#allocation2 + $0xc8] sm:$0xff] %v1121_v43  ;;  %v2194_v49 = vadd.f32 %v2193_v47, %v2192_v44  ;;  %v2195_v50 = vpop.f32.mrb[54].mxu1  ;;  %v2084_v51 = vpop.f32.mrb[55].mxu0 }
 0x1c8   : > { %v2085_v53 = vadd.f32 %v2084_v51, %v2083_v48  ;;  %v2196_v54 = vpop.f32.mrb[55].mxu1 }
 0x1c9   : > { %v1074_v55 = vadd.f32 %v2194_v49, %v2082_v46  ;;  %v2197_v56 = vadd.f32 %v2196_v54, %v2195_v50 }
 0x1cb   : > { %v1122_v58 = vadd.f32 %v1074_v55, %v576_v52  ;;  %v1077_v59 = vadd.f32 %v2197_v56, %v2085_v53 }
 0x1cc   : > { %v2086_v60 = vpop.f32.mrb[56].mxu0 }
 0x1cd   : > { %1154 = vst [vmem:[#allocation2 + $0xd0] sm:$0xff] %v1122_v58  ;;  %v1123_v61 = vadd.f32 %v1077_v59, %v577_v57  ;;  %v2198_v62 = vpop.f32.mrb[56].mxu1  ;;  %v2087_v63 = vpop.f32.mrb[57].mxu0 }
 0x1ce   : > { %v2088_v0 = vadd.f32 %v2087_v63, %v2086_v60  ;;  %v2199_v1 = vpop.f32.mrb[57].mxu1  ;;  %v2089_v2 = vpop.f32.mrb[58].mxu0 }
 0x1cf   : > { %1155 = vst [vmem:[#allocation2 + $0xd8] sm:$0xff] %v1123_v61  ;;  %v2200_v3 = vadd.f32 %v2199_v1, %v2198_v62  ;;  %v2201_v4 = vpop.f32.mrb[58].mxu1  ;;  %v2090_v5 = vpop.f32.mrb[59].mxu0 }
 0x1d0   : > { %v2091_v7 = vadd.f32 %v2090_v5, %v2089_v2  ;;  %v2202_v8 = vpop.f32.mrb[59].mxu1 }
 0x1d1   : > { %v1082_v9 = vadd.f32 %v2200_v3, %v2088_v0  ;;  %v2203_v10 = vadd.f32 %v2202_v8, %v2201_v4 }
 0x1d3   : > { %v1124_v12 = vadd.f32 %v1082_v9, %v578_v6  ;;  %v1085_v13 = vadd.f32 %v2203_v10, %v2091_v7 }
 0x1d4   : > { %v2092_v14 = vpop.f32.mrb[60].mxu0 }
 0x1d5   : > { %1156 = vst [vmem:[#allocation2 + $0xe0] sm:$0xff] %v1124_v12  ;;  %v1125_v15 = vadd.f32 %v1085_v13, %v579_v11  ;;  %v2204_v16 = vpop.f32.mrb[60].mxu1  ;;  %v2093_v17 = vpop.f32.mrb[61].mxu0 }
 0x1d6   : > { %v2094_v18 = vadd.f32 %v2093_v17, %v2092_v14  ;;  %v2205_v19 = vpop.f32.mrb[61].mxu1  ;;  %v2095_v20 = vpop.f32.mrb[62].mxu0 }
 0x1d7   : > { %1157 = vst [vmem:[#allocation2 + $0xe8] sm:$0xff] %v1125_v15  ;;  %v2206_v21 = vadd.f32 %v2205_v19, %v2204_v16  ;;  %v2207_v22 = vpop.f32.mrb[62].mxu1  ;;  %v2096_v23 = vpop.f32.mrb[63].mxu0 }
 0x1d8   : > { %v2097_v25 = vadd.f32 %v2096_v23, %v2095_v20  ;;  %v2208_v26 = vpop.f32.mrb[63].mxu1 }
 0x1d9   : > { %v1090_v27 = vadd.f32 %v2206_v21, %v2094_v18  ;;  %v2209_v28 = vadd.f32 %v2208_v26, %v2207_v22 }
 0x1db   : > { %v1126_v30 = vadd.f32 %v1090_v27, %v580_v24  ;;  %v1093_v31 = vadd.f32 %v2209_v28, %v2097_v25 }
 0x1dd   : > { %1158 = vst [vmem:[#allocation2 + $0xf0] sm:$0xff] %v1126_v30  ;;  %v1127_v32 = vadd.f32 %v1093_v31, %v581_v29 }
 0x1df   : > { %1159 = vst [vmem:[#allocation2 + $0xf8] sm:$0xff] %v1127_v32 }
 0x1e0 PF: > { %v1197_v33 = vld [vmem:[%s2625_s16 + $0x10] sm:$0xff]  ;;  %v1195_v34 = vld [vmem:[%s2625_s16] sm:$0xff]  ;;  %v2462_v35 = vmov 0   ;;  %v1198_v36 = vld [vmem:[%s2625_s16 + $0x18] sm:$0xff]  ;;  %s1890_s29 = sshll.u32 %s2446_s8, 11  ;;  %s1664_s0 = sshll.u32 %s2632_s20, 4  ;;  %s2801_s0 = int_to_ptr.vmem [resolvable:$true] %s1664_s0 }
 0x1e1   : > { %2317 = vset.pattern.permute.xlu1 %v2462_v35  ;;  %2316 = vset.pattern.permute.xlu0 %v2462_v35  ;;  %v1196_v37 = vld [vmem:[%s2625_s16 + $0x8] sm:$0xff]  ;;  %v1199_v39 = vld [vmem:[%s2625_s16 + $0x20] sm:$0xff]  ;;  %v1202_v40 = vld [vmem:[%s2625_s16 + $0x38] sm:$0xff]  ;;  %s2799_s14 = scalar_lea.hbm %s2857_s6, %s1890_s29  ;;  %s2370_s8 = scalar_lea.vmem %s2801_s0, 2048 }
 0x1e2   : > { %1239 = vperm.xlu1 %2317, %v1197_v33   ;;  %1229 = vperm.xlu0 %2316, %v1195_v34   ;;  %v1200_v38 = vld [vmem:[%s2625_s16 + $0x28] sm:$0xff]  ;;  %v1201_v41 = vld [vmem:[%s2625_s16 + $0x30] sm:$0xff]  ;;  %v1203_v43 = vld [vmem:[%s2625_s16 + $0x40] sm:$0xff]  ;;  %p2371_p9 = scmp.ne.s32.totalorder %s2801_s0, %s2370_s8  ;;  %p2877_p11 = scmp.ne.s32.totalorder %s2866_s15, 0 }
 0x1e3   : > { %v1204_v42 = vld [vmem:[%s2625_s16 + $0x48] sm:$0xff]  ;;  %v1206_v44 = vld [vmem:[%s2625_s16 + $0x58] sm:$0xff]  ;;  %v1205_v45 = vld [vmem:[%s2625_s16 + $0x50] sm:$0xff]  ;;  %s2463_s22 = smov [#allocation9]  }
 0x1e4   : > { %v1208_v46 = vld [vmem:[%s2625_s16 + $0x68] sm:$0xff]  ;;  %v1207_v47 = vld [vmem:[%s2625_s16 + $0x60] sm:$0xff]  ;;  %v1210_v48 = vld [vmem:[%s2625_s16 + $0x78] sm:$0xff]  ;;  %p2372_p13 = pnand %p2371_p9, %p2877_p11  ;;  %s2374_s25 = sshll.u32 %s2463_s22, 4  ;;  %s2375_s25 = int_to_ptr.vmem [resolvable:$false] %s2374_s25 }
 0x1e5   : > { %v1209_v49 = vld [vmem:[%s2625_s16 + $0x70] sm:$0xff]  ;;  %v1212_v50 = vld [vmem:[%s2625_s16 + $0x88] sm:$0xff]  ;;  %v1211_v51 = vld [vmem:[%s2625_s16 + $0x80] sm:$0xff]  ;;  %s2376_s23 = scalar_lea.vmem %s2375_s25, 4096  ;;  %p2377_p2 = scmp.lt.s32.totalorder %s2801_s0, %s2375_s25 }
 0x1e6   : > { %1244 = vperm.xlu1 %2317, %v1198_v36   ;;  %1234 = vperm.xlu0 %2316, %v1196_v37   ;;  %v1214_v52 = vld [vmem:[%s2625_s16 + $0x98] sm:$0xff]  ;;  %v1213_v53 = vld [vmem:[%s2625_s16 + $0x90] sm:$0xff]  ;;  %v1216_v54 = vld [vmem:[%s2625_s16 + $0xa8] sm:$0xff]  ;;  %p2373_p1 = pneg %p2372_p13  ;;  %p2378_p3 = scmp.lt.s32.totalorder %s2376_s23, %s2370_s8 }
 0x1e7   : > { %v1215_v55 = vld [vmem:[%s2625_s16 + $0xa0] sm:$0xff]  ;;  %v1218_v56 = vld [vmem:[%s2625_s16 + $0xb8] sm:$0xff]  ;;  %v1217_v57 = vld [vmem:[%s2625_s16 + $0xb0] sm:$0xff] }
 0x1e8   : > { %v1220_v58 = vld [vmem:[%s2625_s16 + $0xc8] sm:$0xff]  ;;  %v1219_v59 = vld [vmem:[%s2625_s16 + $0xc0] sm:$0xff]  ;;  %v1222_v60 = vld [vmem:[%s2625_s16 + $0xd8] sm:$0xff]  ;;  %p2379_p5 = por %p2378_p3, %p2377_p2 }
 0x1e9   : > { %v1221_v61 = vld [vmem:[%s2625_s16 + $0xd0] sm:$0xff]  ;;  %v1224_v62 = vld [vmem:[%s2625_s16 + $0xe8] sm:$0xff]  ;;  %v1223_v63 = vld [vmem:[%s2625_s16 + $0xe0] sm:$0xff] }
 0x1ea   : > { %1254 = vperm.xlu1 %2317, %v1200_v38   ;;  %1249 = vperm.xlu0 %2316, %v1199_v39   ;;  %v1226_v0 = vld [vmem:[%s2625_s16 + $0xf8] sm:$0xff]  ;;  %v1225_v1 = vld [vmem:[%s2625_s16 + $0xf0] sm:$0xff]  ;;  %v1163_v3 = vld [vmem:[#allocation2] sm:$0xff]  ;;  %s2876_s16 = sand.u32 1, %s2438_s30   ;;  %p2380_p8 = pnand %p2379_p5, %p2373_p1 }
 0x1eb   : > { %v1165_v2 = vld [vmem:[#allocation2 + $0x10] sm:$0xff]  ;;  %v2745_v6 = vld [vmem:[%s2856_s5] ss:$0 sm:$0xff]  ;;  %v1166_v9 = vld [vmem:[#allocation2 + $0x18] sm:$0xff]  ;;  %s2806_s21 = scalar_lea.sflag [#allocation8], %s2876_s16 }
 0x1ec   : > { %v1164_v10 = vld [vmem:[#allocation2 + $0x8] sm:$0xff]  ;;  %v1167_v18 = vld [vmem:[#allocation2 + $0x20] sm:$0xff]  ;;  %v1170_v29 = vld [vmem:[#allocation2 + $0x38] sm:$0xff] }
 0x1ed   : > { %v1168_v17 = vld [vmem:[#allocation2 + $0x28] sm:$0xff]  ;;  %v1169_v30 = vld [vmem:[#allocation2 + $0x30] sm:$0xff] }
 0x1ee   : > { %1264 = vperm.xlu1 %2317, %v1202_v40   ;;  %1259 = vperm.xlu0 %2316, %v1201_v41   ;;  %v1172_v41 = vld [vmem:[#allocation2 + $0x48] sm:$0xff] }
 0x1f2   : > { %1274 = vperm.xlu1 %2317, %v1204_v42   ;;  %1269 = vperm.xlu0 %2316, %v1203_v43   ;;  %v1171_v42 = vld [vmem:[#allocation2 + $0x40] sm:$0xff] }
 0x1f6   : > { %1284 = vperm.xlu1 %2317, %v1206_v44   ;;  %1279 = vperm.xlu0 %2316, %v1205_v45  }
 0x1fa   : > { %1294 = vperm.xlu1 %2317, %v1208_v46   ;;  %1289 = vperm.xlu0 %2316, %v1207_v47  }
 0x1fe   : > { %1304 = vperm.xlu1 %2317, %v1210_v48   ;;  %1299 = vperm.xlu0 %2316, %v1209_v49  }
 0x202   : > { %1314 = vperm.xlu1 %2317, %v1212_v50   ;;  %1309 = vperm.xlu0 %2316, %v1211_v51  }
 0x206   : > { %1324 = vperm.xlu1 %2317, %v1214_v52   ;;  %1319 = vperm.xlu0 %2316, %v1213_v53   ;;  %v1174_v52 = vld [vmem:[#allocation2 + $0x58] sm:$0xff]  ;;  %v1173_v53 = vld [vmem:[#allocation2 + $0x50] sm:$0xff] }
 0x20a   : > { %1334 = vperm.xlu1 %2317, %v1216_v54   ;;  %1329 = vperm.xlu0 %2316, %v1215_v55  }
 0x20e   : > { %1344 = vperm.xlu1 %2317, %v1218_v56   ;;  %1339 = vperm.xlu0 %2316, %v1217_v57  }
 0x212   : > { %1354 = vperm.xlu1 %2317, %v1220_v58   ;;  %1349 = vperm.xlu0 %2316, %v1219_v59  }
 0x216   : > { %1364 = vperm.xlu1 %2317, %v1222_v60   ;;  %1359 = vperm.xlu0 %2316, %v1221_v61  }
 0x21a   : > { %1374 = vperm.xlu1 %2317, %v1224_v62   ;;  %1369 = vperm.xlu0 %2316, %v1223_v63   ;;  %v1176_v63 = vld [vmem:[#allocation2 + $0x68] sm:$0xff] }
 0x21e   : > { %1384 = vperm.xlu1 %2317, %v1226_v0   ;;  %1379 = vperm.xlu0 %2316, %v1225_v1   ;;  %v1175_v0 = vld [vmem:[#allocation2 + $0x60] sm:$0xff] }
 0x261   : > { %v1240_v4 = vpop.permute.xlu1 %1239  ;;  %v1230_v5 = vpop.permute.xlu0 %1229 }
 0x262   : > { %v1389_v7 = vmul.f32 %v1240_v4, %v1165_v2  ;;  %v1387_v8 = vmul.f32 %v1230_v5, %v1163_v3 }
 0x264   : > { %v1428_v11 = vadd.f32 %v2745_v6, %v1389_v7  ;;  %v1426_v12 = vadd.f32 %v2745_v6, %v1387_v8 }
 0x265   : > { %v1245_v13 = vpop.permute.xlu1 %1244  ;;  %v1235_v14 = vpop.permute.xlu0 %1234 }
 0x266   : > { %v1390_v15 = vmul.f32 %v1245_v13, %v1166_v9  ;;  %v1388_v16 = vmul.f32 %v1235_v14, %v1164_v10  ;;  %v1460_v21 = vmax.f32 %v1428_v11, 0.0  ;;  %v1458_v22 = vmax.f32 %v1426_v12, 0.0  ;;  %v1178_v11 = vld [vmem:[#allocation2 + $0x78] sm:$0xff]  ;;  %v1177_v12 = vld [vmem:[#allocation2 + $0x70] sm:$0xff] }
 0x268   : > { %v1429_v19 = vadd.f32 %v2745_v6, %v1390_v15  ;;  %v1427_v20 = vadd.f32 %v2745_v6, %v1388_v16 }
 0x269   : > { %v1255_v23 = vpop.permute.xlu1 %1254  ;;  %v1250_v24 = vpop.permute.xlu0 %1249 }
 0x26a   : > { %v1461_v25 = vmax.f32 %v1429_v19, 0.0  ;;  %v1459_v26 = vmax.f32 %v1427_v20, 0.0  ;;  %v1392_v27 = vmul.f32 %v1255_v23, %v1168_v17  ;;  %v1391_v28 = vmul.f32 %v1250_v24, %v1167_v18  ;;  %v1179_v23 = vld [vmem:[#allocation2 + $0x80] sm:$0xff] }
 0x26c   : > { %v1899_v31 = vpack.c.bf16 %v1461_v25, %v1460_v21  ;;  %v1894_v32 = vpack.c.bf16 %v1459_v26, %v1458_v22  ;;  %v1431_v33 = vadd.f32 %v2745_v6, %v1392_v27  ;;  %v1430_v34 = vadd.f32 %v2745_v6, %v1391_v28  ;;  %v1180_v22 = vld [vmem:[#allocation2 + $0x88] sm:$0xff] }
 0x26d   : > { %v1265_v35 = vpop.permute.xlu1 %1264  ;;  %v1260_v36 = vpop.permute.xlu0 %1259 }
 0x26e   : > { %1971 = vst [vmem:[%s2632_s20 + $0x8] sm:$0xff] %v1899_v31   ;;  %1895 = vst [vmem:[%s2632_s20] sm:$0xff] %v1894_v32   ;;  %v1463_v37 = vmax.f32 %v1431_v33, 0.0  ;;  %v1462_v38 = vmax.f32 %v1430_v34, 0.0  ;;  %v1394_v39 = vmul.f32 %v1265_v35, %v1170_v29  ;;  %v1393_v40 = vmul.f32 %v1260_v36, %v1169_v30  ;;  %v1182_v33 = vld [vmem:[#allocation2 + $0x98] sm:$0xff]  ;;  %v1181_v34 = vld [vmem:[#allocation2 + $0x90] sm:$0xff] }
 0x270   : > { %v1904_v43 = vpack.c.bf16 %v1463_v37, %v1462_v38  ;;  %v1433_v44 = vadd.f32 %v2745_v6, %v1394_v39  ;;  %v1432_v45 = vadd.f32 %v2745_v6, %v1393_v40 }
 0x271   : > { %v1275_v46 = vpop.permute.xlu1 %1274  ;;  %v1270_v47 = vpop.permute.xlu0 %1269 }
 0x272   : > { %1972 = vst [vmem:[%s2632_s20 + $0x10] sm:$0xff] %v1904_v43   ;;  %v1465_v48 = vmax.f32 %v1433_v44, 0.0  ;;  %v1464_v49 = vmax.f32 %v1432_v45, 0.0  ;;  %v1396_v50 = vmul.f32 %v1275_v46, %v1172_v41  ;;  %v1395_v51 = vmul.f32 %v1270_v47, %v1171_v42  ;;  %v1184_v44 = vld [vmem:[#allocation2 + $0xa8] sm:$0xff]  ;;  %v1183_v45 = vld [vmem:[#allocation2 + $0xa0] sm:$0xff] }
 0x274   : > { %v1909_v54 = vpack.c.bf16 %v1465_v48, %v1464_v49  ;;  %v1435_v55 = vadd.f32 %v2745_v6, %v1396_v50  ;;  %v1434_v56 = vadd.f32 %v2745_v6, %v1395_v51 }
 0x275   : > { %v1285_v57 = vpop.permute.xlu1 %1284  ;;  %v1280_v58 = vpop.permute.xlu0 %1279 }
 0x276   : > { %1973 = vst [vmem:[%s2632_s20 + $0x18] sm:$0xff] %v1909_v54   ;;  %v1467_v59 = vmax.f32 %v1435_v55, 0.0  ;;  %v1466_v60 = vmax.f32 %v1434_v56, 0.0  ;;  %v1398_v61 = vmul.f32 %v1285_v57, %v1174_v52  ;;  %v1397_v62 = vmul.f32 %v1280_v58, %v1173_v53  ;;  %v1186_v55 = vld [vmem:[#allocation2 + $0xb8] sm:$0xff]  ;;  %v1185_v56 = vld [vmem:[#allocation2 + $0xb0] sm:$0xff] }
 0x278   : > { %v1914_v1 = vpack.c.bf16 %v1467_v59, %v1466_v60  ;;  %v1437_v2 = vadd.f32 %v2745_v6, %v1398_v61  ;;  %v1436_v3 = vadd.f32 %v2745_v6, %v1397_v62 }
 0x279   : > { %v1295_v4 = vpop.permute.xlu1 %1294  ;;  %v1290_v5 = vpop.permute.xlu0 %1289 }
 0x27a   : > { %1974 = vst [vmem:[%s2632_s20 + $0x20] sm:$0xff] %v1914_v1   ;;  %v1469_v7 = vmax.f32 %v1437_v2, 0.0  ;;  %v1468_v8 = vmax.f32 %v1436_v3, 0.0  ;;  %v1400_v9 = vmul.f32 %v1295_v4, %v1176_v63  ;;  %v1399_v10 = vmul.f32 %v1290_v5, %v1175_v0  ;;  %v1188_v2 = vld [vmem:[#allocation2 + $0xc8] sm:$0xff]  ;;  %v1187_v3 = vld [vmem:[#allocation2 + $0xc0] sm:$0xff] }
 0x27c   : > { %v1919_v13 = vpack.c.bf16 %v1469_v7, %v1468_v8  ;;  %v1439_v14 = vadd.f32 %v2745_v6, %v1400_v9  ;;  %v1438_v15 = vadd.f32 %v2745_v6, %v1399_v10 }
 0x27d   : > { %v1305_v16 = vpop.permute.xlu1 %1304  ;;  %v1300_v17 = vpop.permute.xlu0 %1299 }
 0x27e   : > { %1975 = vst [vmem:[%s2632_s20 + $0x28] sm:$0xff] %v1919_v13   ;;  %v1471_v18 = vmax.f32 %v1439_v14, 0.0  ;;  %v1470_v19 = vmax.f32 %v1438_v15, 0.0  ;;  %v1402_v20 = vmul.f32 %v1305_v16, %v1178_v11  ;;  %v1401_v21 = vmul.f32 %v1300_v17, %v1177_v12  ;;  %v1190_v14 = vld [vmem:[#allocation2 + $0xd8] sm:$0xff]  ;;  %v1189_v15 = vld [vmem:[#allocation2 + $0xd0] sm:$0xff] }
 0x280   : > { %v1924_v24 = vpack.c.bf16 %v1471_v18, %v1470_v19  ;;  %v1441_v25 = vadd.f32 %v2745_v6, %v1402_v20  ;;  %v1440_v26 = vadd.f32 %v2745_v6, %v1401_v21 }
 0x281   : > { %v1315_v27 = vpop.permute.xlu1 %1314  ;;  %v1310_v28 = vpop.permute.xlu0 %1309 }
 0x282   : > { %1976 = vst [vmem:[%s2632_s20 + $0x30] sm:$0xff] %v1924_v24   ;;  %v1473_v29 = vmax.f32 %v1441_v25, 0.0  ;;  %v1472_v30 = vmax.f32 %v1440_v26, 0.0  ;;  %v1404_v31 = vmul.f32 %v1315_v27, %v1180_v22  ;;  %v1403_v32 = vmul.f32 %v1310_v28, %v1179_v23  ;;  %v1192_v25 = vld [vmem:[#allocation2 + $0xe8] sm:$0xff]  ;;  %v1191_v26 = vld [vmem:[#allocation2 + $0xe0] sm:$0xff] }
 0x284   : > { %v1929_v35 = vpack.c.bf16 %v1473_v29, %v1472_v30  ;;  %v1443_v36 = vadd.f32 %v2745_v6, %v1404_v31  ;;  %v1442_v37 = vadd.f32 %v2745_v6, %v1403_v32 }
 0x285   : > { %v1325_v38 = vpop.permute.xlu1 %1324  ;;  %v1320_v39 = vpop.permute.xlu0 %1319 }
 0x286   : > { %1977 = vst [vmem:[%s2632_s20 + $0x38] sm:$0xff] %v1929_v35   ;;  %v1475_v40 = vmax.f32 %v1443_v36, 0.0  ;;  %v1474_v41 = vmax.f32 %v1442_v37, 0.0  ;;  %v1406_v42 = vmul.f32 %v1325_v38, %v1182_v33  ;;  %v1405_v43 = vmul.f32 %v1320_v39, %v1181_v34  ;;  %v1194_v36 = vld [vmem:[#allocation2 + $0xf8] sm:$0xff]  ;;  %v1193_v37 = vld [vmem:[#allocation2 + $0xf0] sm:$0xff] }
 0x288   : > { %v1934_v46 = vpack.c.bf16 %v1475_v40, %v1474_v41  ;;  %v1445_v47 = vadd.f32 %v2745_v6, %v1406_v42  ;;  %v1444_v48 = vadd.f32 %v2745_v6, %v1405_v43 }
 0x289   : > { %v1335_v49 = vpop.permute.xlu1 %1334  ;;  %v1330_v50 = vpop.permute.xlu0 %1329 }
 0x28a   : > { %1978 = vst [vmem:[%s2632_s20 + $0x40] sm:$0xff] %v1934_v46   ;;  %v1477_v51 = vmax.f32 %v1445_v47, 0.0  ;;  %v1476_v52 = vmax.f32 %v1444_v48, 0.0  ;;  %v1408_v53 = vmul.f32 %v1335_v49, %v1184_v44  ;;  %v1407_v54 = vmul.f32 %v1330_v50, %v1183_v45 }
 0x28c   : > { %v1939_v57 = vpack.c.bf16 %v1477_v51, %v1476_v52  ;;  %v1447_v58 = vadd.f32 %v2745_v6, %v1408_v53  ;;  %v1446_v59 = vadd.f32 %v2745_v6, %v1407_v54 }
 0x28d   : > { %v1345_v60 = vpop.permute.xlu1 %1344  ;;  %v1340_v61 = vpop.permute.xlu0 %1339 }
 0x28e   : > { %1979 = vst [vmem:[%s2632_s20 + $0x48] sm:$0xff] %v1939_v57   ;;  %v1479_v62 = vmax.f32 %v1447_v58, 0.0  ;;  %v1478_v63 = vmax.f32 %v1446_v59, 0.0  ;;  %v1410_v0 = vmul.f32 %v1345_v60, %v1186_v55  ;;  %v1409_v1 = vmul.f32 %v1340_v61, %v1185_v56 }
 0x290   : > { %v1944_v4 = vpack.c.bf16 %v1479_v62, %v1478_v63  ;;  %v1449_v5 = vadd.f32 %v2745_v6, %v1410_v0  ;;  %v1448_v7 = vadd.f32 %v2745_v6, %v1409_v1 }
 0x291   : > { %v1355_v8 = vpop.permute.xlu1 %1354  ;;  %v1350_v9 = vpop.permute.xlu0 %1349 }
 0x292   : > { %1980 = vst [vmem:[%s2632_s20 + $0x50] sm:$0xff] %v1944_v4   ;;  %v1481_v10 = vmax.f32 %v1449_v5, 0.0  ;;  %v1480_v11 = vmax.f32 %v1448_v7, 0.0  ;;  %v1412_v12 = vmul.f32 %v1355_v8, %v1188_v2  ;;  %v1411_v13 = vmul.f32 %v1350_v9, %v1187_v3 }
 0x294   : > { %v1949_v16 = vpack.c.bf16 %v1481_v10, %v1480_v11  ;;  %v1451_v17 = vadd.f32 %v2745_v6, %v1412_v12  ;;  %v1450_v18 = vadd.f32 %v2745_v6, %v1411_v13 }
 0x295   : > { %v1365_v19 = vpop.permute.xlu1 %1364  ;;  %v1360_v20 = vpop.permute.xlu0 %1359 }
 0x296   : > { %1981 = vst [vmem:[%s2632_s20 + $0x58] sm:$0xff] %v1949_v16   ;;  %v1483_v21 = vmax.f32 %v1451_v17, 0.0  ;;  %v1482_v22 = vmax.f32 %v1450_v18, 0.0  ;;  %v1414_v23 = vmul.f32 %v1365_v19, %v1190_v14  ;;  %v1413_v24 = vmul.f32 %v1360_v20, %v1189_v15 }
 0x298   : > { %v1954_v27 = vpack.c.bf16 %v1483_v21, %v1482_v22  ;;  %v1453_v28 = vadd.f32 %v2745_v6, %v1414_v23  ;;  %v1452_v29 = vadd.f32 %v2745_v6, %v1413_v24 }
 0x299   : > { %v1375_v30 = vpop.permute.xlu1 %1374  ;;  %v1370_v31 = vpop.permute.xlu0 %1369 }
 0x29a   : > { %1982 = vst [vmem:[%s2632_s20 + $0x60] sm:$0xff] %v1954_v27   ;;  %v1485_v32 = vmax.f32 %v1453_v28, 0.0  ;;  %v1484_v33 = vmax.f32 %v1452_v29, 0.0  ;;  %v1416_v34 = vmul.f32 %v1375_v30, %v1192_v25  ;;  %v1415_v35 = vmul.f32 %v1370_v31, %v1191_v26 }
 0x29c   : > { %v1959_v38 = vpack.c.bf16 %v1485_v32, %v1484_v33  ;;  %v1455_v39 = vadd.f32 %v2745_v6, %v1416_v34  ;;  %v1454_v40 = vadd.f32 %v2745_v6, %v1415_v35 }
 0x29d   : > { %v1385_v41 = vpop.permute.xlu1 %1384  ;;  %v1380_v42 = vpop.permute.xlu0 %1379 }
 0x29e   : > { %1983 = vst [vmem:[%s2632_s20 + $0x68] sm:$0xff] %v1959_v38   ;;  %v1487_v43 = vmax.f32 %v1455_v39, 0.0  ;;  %v1486_v44 = vmax.f32 %v1454_v40, 0.0  ;;  %v1418_v45 = vmul.f32 %v1385_v41, %v1194_v36  ;;  %v1417_v46 = vmul.f32 %v1380_v42, %v1193_v37 }
 0x2a0   : > { %v1964_v47 = vpack.c.bf16 %v1487_v43, %v1486_v44  ;;  %v1457_v48 = vadd.f32 %v2745_v6, %v1418_v45  ;;  %v1456_v49 = vadd.f32 %v2745_v6, %v1417_v46 }
 0x2a2   : > { %1984 = vst [vmem:[%s2632_s20 + $0x70] sm:$0xff] %v1964_v47   ;;  %v1489_v50 = vmax.f32 %v1457_v48, 0.0  ;;  %v1488_v51 = vmax.f32 %v1456_v49, 0.0 }
 0x2a4   : > { %v1969_v52 = vpack.c.bf16 %v1489_v50, %v1488_v51 }
 0x2a6   : > { %1985 = vst [vmem:[%s2632_s20 + $0x78] sm:$0xff] %v1969_v52  }
 0x2a7   : > { %2383 = shalt.err (!%p2380_p8)
}
 0x2a8   : > { %s2384_s20 = scalar_lea.hbm %s2799_s14, 2048  ;;  %s2388_s27 = scalar_lea.hbm %s2857_s6, 4096 }
 0x2a9   : > { %p2385_p10 = scmp.ne.s32.totalorder %s2799_s14, %s2384_s20  ;;  %p2389_p4 = scmp.lt.u32.totalorder %s2799_s14, %s2857_s6 }
 0x2aa   : > { %p2390_p6 = scmp.lt.u32.totalorder %s2388_s27, %s2384_s20  ;;  %p2392_p9 = scmp.lt.u32.totalorder %s2384_s20, %s2799_s14 }
 0x2ab   : > { %p2386_p12 = pnand %p2385_p10, %p2877_p11 }
 0x2ac   : > { %p2391_p7 = por %p2390_p6, %p2389_p4 }
 0x2ad   : > { %p2387_p0 = pneg %p2386_p12 }
 0x2ae   : > { %p2393_p13 = por %p2392_p9, %p2391_p7 }
 0x2b0   : > { %p2394_p1 = pnand %p2393_p13, %p2387_p0 }
 0x2b2   : > { %2397 = shalt.err (!%p2394_p1)
}
 0x2b3   : > { %s2464_s28 = smov 64   ;;  %s2465_s29 = smov 4  }
 0x2b4   : > { %2214 = dma.vmem_to_hbm [thread:$0]  (%p2877_p11), %s2801_s0, 2048, %s2799_s14, %s2806_s21, %s2464_s28, %s2464_s28, %s2465_s29  }
 0x2b5 PF: > { %p2226_p2 = scmp.ge.s32.totalorder %s2454_s10, 2  ;;  %s1679_s11 = sand.u32 1, %s2434_s1  }
 0x2b6   : > { %p2878_p3 = scmp.ne.s32.totalorder %s2867_s17, 0  ;;  %s1680_s12 = scalar_lea.sflag [#allocation8], %s1679_s11 }
 0x2b8   : > { %p2221_p5 = pnand %p2226_p2, %p2878_p3 }
 0x2ba   : > { %2429 = dma.done.wait (!%p2221_p5), %s1680_s12, 2048  }
 0x2bb   : > { %2431 = vsyncadd (!%p2221_p5), %s1680_s12, 4294965248  ;;  %s30_s10 = sadd.s32 1, %s2454_s10   ;;  %s2879_s1 = smov %s2438_s30 }
 0x2bc   : > { %p27_p8 = scmp.ge.s32.totalorder %s30_s10, 4   ;;  %s2880_s30 = smov %s2442_s7 }
 0x2bd   : > { %s2881_s7 = smov %s2560_s18  ;;  %s2882_s8 = smov %s2450_s9 }
 0x2be   : > { %s2883_s9 = smov %s2885_s13  ;;  %29 = sbr.rel (!%p27_p8) target bundleno = 31 (0x1f), region = 92 }
 0x2c5   :  { %1685 = vsyncpa [#allocation7], 1 }
 0x2c6   :  { %1687 = vsyncpa [#allocation7 + $0x1], 1 }
 0x2c7   :  { %1688 = vsyncpa [#allocation8], 1 }
 0x2c8   :  { %1690 = vsyncpa [#allocation8 + $0x1], 1 }

</bundles_post_ra>
